<compile_context>
chip_gen: v7x
topology: tpu7x:2x2x1
jax: 0.10.0
libtpu: 0.0.40
codegen_flags: <defaults>
</compile_context>

<pallas_src>
import functools

import jax
import jax.numpy as jnp
import numpy as np
from jax.experimental import pallas as pl
from jax.experimental.pallas import tpu as pltpu


# --------------------------------------------------------------------------
# Fused residual-block kernel (one batch element per grid step)
# --------------------------------------------------------------------------
def _resblock_kernel(x_ref, w1_ref, b1_ref, w2_ref, b2_ref, o_ref, h1_ref,
                     *, H, W, lead):
    # x_ref : (C, LP)  f32   vertically padded input with flattened pixels:
    #                        LP = lead + (H+2)*W + 1 and
    #                        x_ref[c, lead + r*W + w] == x_pad[c, r, w]
    # w*_ref: (9, C, C) bf16 per-tap weights, index k = ky*3 + kx, [k, co, ci]
    # b*_ref: (C, 1)   f32
    # o_ref : (C, H*W) f32
    # h1_ref: (C, LP)  bf16  VMEM scratch holding relu(conv1(x)), same layout
    C = x_ref.shape[0]
    HW = H * W
    base = lead + W                         # flat index of pixel (0, 0)

    # Hoisted lane masks for the columns that wrap horizontally when the
    # flattened pixel axis is shifted by -1 / +1 (left / right conv taps).
    col = jax.lax.broadcasted_iota(jnp.int32, (C, HW), 1) % W
    keep_l = col != 0                       # kill w == 0     for kx == 0 taps
    keep_r = col != (W - 1)                 # kill w == W - 1 for kx == 2 taps

    def conv3x3(src_ref, w_ref, cast_bf16):
        # 9 accumulating MXU dots: acc[co, p] += W[k, co, ci] * X_shift[ci, p]
        acc = jnp.zeros((C, HW), jnp.float32)
        for ky in range(3):
            for kx in range(3):
                s = lead - 1 + ky * W + kx          # static lane offset
                t = src_ref[:, s:s + HW]            # (C, HW) shifted taps
                if cast_bf16:
                    t = t.astype(jnp.bfloat16)
                if kx == 0:
                    t = jnp.where(keep_l, t, 0.0)
                elif kx == 2:
                    t = jnp.where(keep_r, t, 0.0)
                acc += jnp.dot(w_ref[ky * 3 + kx], t,
                               preferred_element_type=jnp.float32)
        return acc

    # conv1 + bias + ReLU -> bf16 padded scratch (re-zero only the halo border)
    y1 = jnp.maximum(conv3x3(x_ref, w1_ref, True) + b1_ref[...], 0.0)
    h1_ref[:, 0:base] = jnp.zeros((C, base), jnp.bfloat16)
    h1_ref[:, base:base + HW] = y1.astype(jnp.bfloat16)
    h1_ref[:, base + HW:] = jnp.zeros((C, W + 1), jnp.bfloat16)

    # conv2 + bias + residual add (f32) -> output
    y2 = conv3x3(h1_ref, w2_ref, False) + b2_ref[...]
    o_ref[...] = x_ref[:, base:base + HW] + y2


# --------------------------------------------------------------------------
# Wrapper: NCHW f32 in / NCHW f32 out (PyTorch interface)
# --------------------------------------------------------------------------
def residual_block_nobn(x_nchw, params):
    """x_nchw: (N, C, H, W) f32 -> x + conv2(relu(conv1(x)))."""
    n, c, h, w = x_nchw.shape
    hw = h * w
    lead = (-w) % 128 or 128                # left halo; pixel (0,0) lane-aligned
    lp = lead + (h + 2) * w + 1

    # Vertical 1-row halo + flatten pixels + flat left/right halo (HBM side).
    xp = jnp.pad(x_nchw, ((0, 0), (0, 0), (1, 1), (0, 0)))
    xp = jnp.pad(xp.reshape(n, c, (h + 2) * w), ((0, 0), (0, 0), (lead, 1)))

    # Per-tap weight layout (9, Cout, Cin) bf16, k = ky*3 + kx.
    w1 = jnp.transpose(params["w1"], (2, 3, 0, 1)).reshape(9, c, c).astype(jnp.bfloat16)
    w2 = jnp.transpose(params["w2"], (2, 3, 0, 1)).reshape(9, c, c).astype(jnp.bfloat16)
    b1 = params["b1"].reshape(c, 1).astype(jnp.float32)
    b2 = params["b2"].reshape(c, 1).astype(jnp.float32)

    out = pl.pallas_call(
        functools.partial(_resblock_kernel, H=h, W=w, lead=lead),
        grid=(n,),
        in_specs=[
            pl.BlockSpec((None, c, lp), lambda i: (i, 0, 0)),    # padded x
            pl.BlockSpec((9, c, c), lambda i: (0, 0, 0)),        # w1
            pl.BlockSpec((c, 1), lambda i: (0, 0)),              # b1
            pl.BlockSpec((9, c, c), lambda i: (0, 0, 0)),        # w2
            pl.BlockSpec((c, 1), lambda i: (0, 0)),              # b2
        ],
        out_specs=pl.BlockSpec((None, c, hw), lambda i: (i, 0, 0)),
        out_shape=jax.ShapeDtypeStruct((n, c, hw), jnp.float32),
        scratch_shapes=[pltpu.VMEM((c, lp), jnp.bfloat16)],      # relu(conv1)
        compiler_params=pltpu.CompilerParams(
            dimension_semantics=("parallel",)),
    )(xp, w1, b1, w2, b2)

    return out.reshape(n, c, h, w)


# --------------------------------------------------------------------------
# Parameter init: matches initialize_weights(..., 0.1) -> kaiming_normal
# fan_in (gain sqrt(2)) scaled by 0.1, zero bias.  PyTorch (Cout,Cin,kH,kW).
# --------------------------------------------------------------------------
def init_params(key, nf):
    k1, k2 = jax.random.split(key)
    fan_in = 9 * nf
    std = 0.1 * (2.0 / fan_in) ** 0.5
    return {
        "w1": std * jax.random.normal(k1, (nf, nf, 3, 3), jnp.float32),
        "b1": jnp.zeros((nf,), jnp.float32),
        "w2": std * jax.random.normal(k2, (nf, nf, 3, 3), jnp.float32),
        "b2": jnp.zeros((nf,), jnp.float32),
    }


# --------------------------------------------------------------------------
# NumPy f32 reference for correctness check
# --------------------------------------------------------------------------
def _conv3x3_ref(x, w, b):
    # x: (N, Cin, H, W), w: (Cout, Cin, 3, 3), b: (Cout,)
    n, ci, h, wd = x.shape
    xp = np.pad(x, ((0, 0), (0, 0), (1, 1), (1, 1)))
    out = np.zeros((n, w.shape[0], h, wd), np.float64)
    for ky in range(3):
        for kx in range(3):
            out += np.einsum("oi,nihw->nohw", w[:, :, ky, kx],
                             xp[:, :, ky:ky + h, kx:kx + wd])
    return (out + b[None, :, None, None]).astype(np.float32)


if __name__ == "__main__":
    nf, N, H, W = 64, 2, 16, 16                # nn.Conv2d(nf, nf, 3, 1, 1)
    kx_, kp = jax.random.split(jax.random.PRNGKey(0))
    x = jax.random.normal(kx_, (N, nf, H, W), jnp.float32)
    params = init_params(kp, nf)

    fwd = jax.jit(residual_block_nobn)
    out = fwd(x, params)
    jax.block_until_ready(out)
    assert out.shape == (N, nf, H, W) and out.dtype == jnp.float32

    # Reference: identity + conv2(relu(conv1(x))) in f32
    xn = np.asarray(x)
    p = {k: np.asarray(v) for k, v in params.items()}
    h1 = np.maximum(_conv3x3_ref(xn, p["w1"], p["b1"]), 0.0)
    ref = xn + _conv3x3_ref(h1, p["w2"], p["b2"])
    np.testing.assert_allclose(np.asarray(out), ref, rtol=5e-3, atol=2e-3)

    print("KERNEL_OK")
</pallas_src>

<mosaic_0001>
module attributes {stable_mosaic.version = 11 : i64} {
  func.func @_resblock_kernel(%arg0: i32, %arg1: memref<1x64x401xf32, #tpu.memory_space<vmem>>, %arg2: memref<9x64x64xbf16, #tpu.memory_space<vmem>>, %arg3: memref<64x1xf32, #tpu.memory_space<vmem>>, %arg4: memref<9x64x64xbf16, #tpu.memory_space<vmem>>, %arg5: memref<64x1xf32, #tpu.memory_space<vmem>>, %arg6: memref<1x64x256xf32, #tpu.memory_space<vmem>>, %arg7: memref<64x401xbf16, #tpu.memory_space<vmem>>) attributes {dimension_semantics = [#tpu.dimension_semantics<parallel>], iteration_bounds = array<i64: 2>, scalar_prefetch = 0 : i64, scratch_operands = 1 : i64, tpu.core_type = #tpu.core_type<tc>, window_params = [{transform_indices = @transform_0, window_bounds = array<i64: 1, 64, 401>}, {pipeline_mode = #tpu.pipeline_mode<synchronous>, transform_indices = @transform_1, window_bounds = array<i64: 9, 64, 64>}, {pipeline_mode = #tpu.pipeline_mode<synchronous>, transform_indices = @transform_2, window_bounds = array<i64: 64, 1>}, {pipeline_mode = #tpu.pipeline_mode<synchronous>, transform_indices = @transform_3, window_bounds = array<i64: 9, 64, 64>}, {pipeline_mode = #tpu.pipeline_mode<synchronous>, transform_indices = @transform_4, window_bounds = array<i64: 64, 1>}, {transform_indices = @transform_5, window_bounds = array<i64: 1, 64, 256>}]} {
    %0 = tpu.iota {dimensions = array<i32: 1>} : vector<64x256xi32>
    %c16_i32 = arith.constant 16 : i32
    %c0_i32 = arith.constant 0 : i32
    %1 = arith.cmpi eq, %c16_i32, %c0_i32 : i32
    %c1_i32 = arith.constant 1 : i32
    %2 = arith.select %1, %c1_i32, %c16_i32 : i32
    %3 = vector.broadcast %2 : i32 to vector<64x256xi32>
    %4 = arith.remsi %0, %3 : vector<64x256xi32>
    %c0_i32_0 = arith.constant 0 : i32
    %5 = vector.broadcast %c0_i32_0 : i32 to vector<64x256xi32>
    %6 = arith.cmpi ne, %4, %5 : vector<64x256xi32>
    %c0_i32_1 = arith.constant 0 : i32
    %7 = vector.broadcast %c0_i32_1 : i32 to vector<64x256xi32>
    %8 = arith.cmpi slt, %4, %7 : vector<64x256xi32>
    %c0_i32_2 = arith.constant 0 : i32
    %9 = arith.cmpi slt, %2, %c0_i32_2 : i32
    %10 = vector.broadcast %9 : i1 to vector<64x256xi1>
    %11 = vector.broadcast %10 : vector<64x256xi1> to vector<64x256xi1>
    %12 = arith.xori %8, %11 : vector<64x256xi1>
    %13 = arith.andi %12, %6 : vector<64x256xi1>
    %14 = vector.broadcast %2 : i32 to vector<64x256xi32>
    %15 = arith.addi %4, %14 : vector<64x256xi32>
    %16 = arith.select %13, %15, %4 : vector<64x256xi1>, vector<64x256xi32>
    %c0_i32_3 = arith.constant 0 : i32
    %17 = vector.broadcast %c0_i32_3 : i32 to vector<64x256xi32>
    %18 = arith.cmpi ne, %16, %17 : vector<64x256xi32>
    %c15_i32 = arith.constant 15 : i32
    %19 = vector.broadcast %c15_i32 : i32 to vector<64x256xi32>
    %20 = arith.cmpi ne, %16, %19 : vector<64x256xi32>
    %cst = arith.constant 0.000000e+00 : f32
    %21 = vector.broadcast %cst : f32 to vector<64x256xf32>
    %c0 = arith.constant 0 : index
    %c0_4 = arith.constant 0 : index
    %c111 = arith.constant 111 : index
    %22 = vector.load %arg1[%c0, %c0_4, %c111] : memref<1x64x401xf32, #tpu.memory_space<vmem>>, vector<1x64x256xf32>
    %23 = vector.shape_cast %22 : vector<1x64x256xf32> to vector<64x256xf32>
    %24 = arith.truncf %23 : vector<64x256xf32> to vector<64x256xbf16>
    %cst_5 = arith.constant 0.000000e+00 : f32
    %25 = arith.truncf %cst_5 : f32 to bf16
    %26 = vector.broadcast %25 : bf16 to vector<64x256xbf16>
    %27 = arith.select %18, %24, %26 : vector<64x256xi1>, vector<64x256xbf16>
    %c0_6 = arith.constant 0 : index
    %c0_7 = arith.constant 0 : index
    %c0_8 = arith.constant 0 : index
    %28 = vector.load %arg2[%c0_6, %c0_7, %c0_8] : memref<9x64x64xbf16, #tpu.memory_space<vmem>>, vector<1x64x64xbf16>
    %29 = vector.shape_cast %28 : vector<1x64x64xbf16> to vector<64x64xbf16>
    %cst_9 = arith.constant dense<0.000000e+00> : vector<64x256xf32>
    %30 = tpu.matmul %29, %27, %cst_9 {dimension_numbers = #tpu.dot_dimension_numbers<[1], [0], [0], [1], [0, 0, 1, 1], [], []>} : vector<64x64xbf16>, vector<64x256xbf16>, vector<64x256xf32> -> vector<64x256xf32>
    %31 = arith.addf %21, %30 : vector<64x256xf32>
    %c0_10 = arith.constant 0 : index
    %c0_11 = arith.constant 0 : index
    %c112 = arith.constant 112 : index
    %32 = vector.load %arg1[%c0_10, %c0_11, %c112] : memref<1x64x401xf32, #tpu.memory_space<vmem>>, vector<1x64x256xf32>
    %33 = vector.shape_cast %32 : vector<1x64x256xf32> to vector<64x256xf32>
    %34 = arith.truncf %33 : vector<64x256xf32> to vector<64x256xbf16>
    %c1 = arith.constant 1 : index
    %c0_12 = arith.constant 0 : index
    %c0_13 = arith.constant 0 : index
    %35 = vector.load %arg2[%c1, %c0_12, %c0_13] : memref<9x64x64xbf16, #tpu.memory_space<vmem>>, vector<1x64x64xbf16>
    %36 = vector.shape_cast %35 : vector<1x64x64xbf16> to vector<64x64xbf16>
    %cst_14 = arith.constant dense<0.000000e+00> : vector<64x256xf32>
    %37 = tpu.matmul %36, %34, %cst_14 {dimension_numbers = #tpu.dot_dimension_numbers<[1], [0], [0], [1], [0, 0, 1, 1], [], []>} : vector<64x64xbf16>, vector<64x256xbf16>, vector<64x256xf32> -> vector<64x256xf32>
    %38 = arith.addf %31, %37 : vector<64x256xf32>
    %c0_15 = arith.constant 0 : index
    %c0_16 = arith.constant 0 : index
    %c113 = arith.constant 113 : index
    %39 = vector.load %arg1[%c0_15, %c0_16, %c113] : memref<1x64x401xf32, #tpu.memory_space<vmem>>, vector<1x64x256xf32>
    %40 = vector.shape_cast %39 : vector<1x64x256xf32> to vector<64x256xf32>
    %41 = arith.truncf %40 : vector<64x256xf32> to vector<64x256xbf16>
    %cst_17 = arith.constant 0.000000e+00 : f32
    %42 = arith.truncf %cst_17 : f32 to bf16
    %43 = vector.broadcast %42 : bf16 to vector<64x256xbf16>
    %44 = arith.select %20, %41, %43 : vector<64x256xi1>, vector<64x256xbf16>
    %c2 = arith.constant 2 : index
    %c0_18 = arith.constant 0 : index
    %c0_19 = arith.constant 0 : index
    %45 = vector.load %arg2[%c2, %c0_18, %c0_19] : memref<9x64x64xbf16, #tpu.memory_space<vmem>>, vector<1x64x64xbf16>
    %46 = vector.shape_cast %45 : vector<1x64x64xbf16> to vector<64x64xbf16>
    %cst_20 = arith.constant dense<0.000000e+00> : vector<64x256xf32>
    %47 = tpu.matmul %46, %44, %cst_20 {dimension_numbers = #tpu.dot_dimension_numbers<[1], [0], [0], [1], [0, 0, 1, 1], [], []>} : vector<64x64xbf16>, vector<64x256xbf16>, vector<64x256xf32> -> vector<64x256xf32>
    %48 = arith.addf %38, %47 : vector<64x256xf32>
    %c0_21 = arith.constant 0 : index
    %c0_22 = arith.constant 0 : index
    %c127 = arith.constant 127 : index
    %49 = vector.load %arg1[%c0_21, %c0_22, %c127] : memref<1x64x401xf32, #tpu.memory_space<vmem>>, vector<1x64x256xf32>
    %50 = vector.shape_cast %49 : vector<1x64x256xf32> to vector<64x256xf32>
    %51 = arith.truncf %50 : vector<64x256xf32> to vector<64x256xbf16>
    %cst_23 = arith.constant 0.000000e+00 : f32
    %52 = arith.truncf %cst_23 : f32 to bf16
    %53 = vector.broadcast %52 : bf16 to vector<64x256xbf16>
    %54 = arith.select %18, %51, %53 : vector<64x256xi1>, vector<64x256xbf16>
    %c3 = arith.constant 3 : index
    %c0_24 = arith.constant 0 : index
    %c0_25 = arith.constant 0 : index
    %55 = vector.load %arg2[%c3, %c0_24, %c0_25] : memref<9x64x64xbf16, #tpu.memory_space<vmem>>, vector<1x64x64xbf16>
    %56 = vector.shape_cast %55 : vector<1x64x64xbf16> to vector<64x64xbf16>
    %cst_26 = arith.constant dense<0.000000e+00> : vector<64x256xf32>
    %57 = tpu.matmul %56, %54, %cst_26 {dimension_numbers = #tpu.dot_dimension_numbers<[1], [0], [0], [1], [0, 0, 1, 1], [], []>} : vector<64x64xbf16>, vector<64x256xbf16>, vector<64x256xf32> -> vector<64x256xf32>
    %58 = arith.addf %48, %57 : vector<64x256xf32>
    %c0_27 = arith.constant 0 : index
    %c0_28 = arith.constant 0 : index
    %c128 = arith.constant 128 : index
    %59 = vector.load %arg1[%c0_27, %c0_28, %c128] : memref<1x64x401xf32, #tpu.memory_space<vmem>>, vector<1x64x256xf32>
    %60 = vector.shape_cast %59 : vector<1x64x256xf32> to vector<64x256xf32>
    %61 = arith.truncf %60 : vector<64x256xf32> to vector<64x256xbf16>
    %c4 = arith.constant 4 : index
    %c0_29 = arith.constant 0 : index
    %c0_30 = arith.constant 0 : index
    %62 = vector.load %arg2[%c4, %c0_29, %c0_30] : memref<9x64x64xbf16, #tpu.memory_space<vmem>>, vector<1x64x64xbf16>
    %63 = vector.shape_cast %62 : vector<1x64x64xbf16> to vector<64x64xbf16>
    %cst_31 = arith.constant dense<0.000000e+00> : vector<64x256xf32>
    %64 = tpu.matmul %63, %61, %cst_31 {dimension_numbers = #tpu.dot_dimension_numbers<[1], [0], [0], [1], [0, 0, 1, 1], [], []>} : vector<64x64xbf16>, vector<64x256xbf16>, vector<64x256xf32> -> vector<64x256xf32>
    %65 = arith.addf %58, %64 : vector<64x256xf32>
    %c0_32 = arith.constant 0 : index
    %c0_33 = arith.constant 0 : index
    %c129 = arith.constant 129 : index
    %66 = vector.load %arg1[%c0_32, %c0_33, %c129] : memref<1x64x401xf32, #tpu.memory_space<vmem>>, vector<1x64x256xf32>
    %67 = vector.shape_cast %66 : vector<1x64x256xf32> to vector<64x256xf32>
    %68 = arith.truncf %67 : vector<64x256xf32> to vector<64x256xbf16>
    %cst_34 = arith.constant 0.000000e+00 : f32
    %69 = arith.truncf %cst_34 : f32 to bf16
    %70 = vector.broadcast %69 : bf16 to vector<64x256xbf16>
    %71 = arith.select %20, %68, %70 : vector<64x256xi1>, vector<64x256xbf16>
    %c5 = arith.constant 5 : index
    %c0_35 = arith.constant 0 : index
    %c0_36 = arith.constant 0 : index
    %72 = vector.load %arg2[%c5, %c0_35, %c0_36] : memref<9x64x64xbf16, #tpu.memory_space<vmem>>, vector<1x64x64xbf16>
    %73 = vector.shape_cast %72 : vector<1x64x64xbf16> to vector<64x64xbf16>
    %cst_37 = arith.constant dense<0.000000e+00> : vector<64x256xf32>
    %74 = tpu.matmul %73, %71, %cst_37 {dimension_numbers = #tpu.dot_dimension_numbers<[1], [0], [0], [1], [0, 0, 1, 1], [], []>} : vector<64x64xbf16>, vector<64x256xbf16>, vector<64x256xf32> -> vector<64x256xf32>
    %75 = arith.addf %65, %74 : vector<64x256xf32>
    %c0_38 = arith.constant 0 : index
    %c0_39 = arith.constant 0 : index
    %c143 = arith.constant 143 : index
    %76 = vector.load %arg1[%c0_38, %c0_39, %c143] : memref<1x64x401xf32, #tpu.memory_space<vmem>>, vector<1x64x256xf32>
    %77 = vector.shape_cast %76 : vector<1x64x256xf32> to vector<64x256xf32>
    %78 = arith.truncf %77 : vector<64x256xf32> to vector<64x256xbf16>
    %cst_40 = arith.constant 0.000000e+00 : f32
    %79 = arith.truncf %cst_40 : f32 to bf16
    %80 = vector.broadcast %79 : bf16 to vector<64x256xbf16>
    %81 = arith.select %18, %78, %80 : vector<64x256xi1>, vector<64x256xbf16>
    %c6 = arith.constant 6 : index
    %c0_41 = arith.constant 0 : index
    %c0_42 = arith.constant 0 : index
    %82 = vector.load %arg2[%c6, %c0_41, %c0_42] : memref<9x64x64xbf16, #tpu.memory_space<vmem>>, vector<1x64x64xbf16>
    %83 = vector.shape_cast %82 : vector<1x64x64xbf16> to vector<64x64xbf16>
    %cst_43 = arith.constant dense<0.000000e+00> : vector<64x256xf32>
    %84 = tpu.matmul %83, %81, %cst_43 {dimension_numbers = #tpu.dot_dimension_numbers<[1], [0], [0], [1], [0, 0, 1, 1], [], []>} : vector<64x64xbf16>, vector<64x256xbf16>, vector<64x256xf32> -> vector<64x256xf32>
    %85 = arith.addf %75, %84 : vector<64x256xf32>
    %c0_44 = arith.constant 0 : index
    %c0_45 = arith.constant 0 : index
    %c144 = arith.constant 144 : index
    %86 = vector.load %arg1[%c0_44, %c0_45, %c144] : memref<1x64x401xf32, #tpu.memory_space<vmem>>, vector<1x64x256xf32>
    %87 = vector.shape_cast %86 : vector<1x64x256xf32> to vector<64x256xf32>
    %88 = arith.truncf %87 : vector<64x256xf32> to vector<64x256xbf16>
    %c7 = arith.constant 7 : index
    %c0_46 = arith.constant 0 : index
    %c0_47 = arith.constant 0 : index
    %89 = vector.load %arg2[%c7, %c0_46, %c0_47] : memref<9x64x64xbf16, #tpu.memory_space<vmem>>, vector<1x64x64xbf16>
    %90 = vector.shape_cast %89 : vector<1x64x64xbf16> to vector<64x64xbf16>
    %cst_48 = arith.constant dense<0.000000e+00> : vector<64x256xf32>
    %91 = tpu.matmul %90, %88, %cst_48 {dimension_numbers = #tpu.dot_dimension_numbers<[1], [0], [0], [1], [0, 0, 1, 1], [], []>} : vector<64x64xbf16>, vector<64x256xbf16>, vector<64x256xf32> -> vector<64x256xf32>
    %92 = arith.addf %85, %91 : vector<64x256xf32>
    %c0_49 = arith.constant 0 : index
    %c0_50 = arith.constant 0 : index
    %c145 = arith.constant 145 : index
    %93 = vector.load %arg1[%c0_49, %c0_50, %c145] : memref<1x64x401xf32, #tpu.memory_space<vmem>>, vector<1x64x256xf32>
    %94 = vector.shape_cast %93 : vector<1x64x256xf32> to vector<64x256xf32>
    %95 = arith.truncf %94 : vector<64x256xf32> to vector<64x256xbf16>
    %cst_51 = arith.constant 0.000000e+00 : f32
    %96 = arith.truncf %cst_51 : f32 to bf16
    %97 = vector.broadcast %96 : bf16 to vector<64x256xbf16>
    %98 = arith.select %20, %95, %97 : vector<64x256xi1>, vector<64x256xbf16>
    %c8 = arith.constant 8 : index
    %c0_52 = arith.constant 0 : index
    %c0_53 = arith.constant 0 : index
    %99 = vector.load %arg2[%c8, %c0_52, %c0_53] : memref<9x64x64xbf16, #tpu.memory_space<vmem>>, vector<1x64x64xbf16>
    %100 = vector.shape_cast %99 : vector<1x64x64xbf16> to vector<64x64xbf16>
    %cst_54 = arith.constant dense<0.000000e+00> : vector<64x256xf32>
    %101 = tpu.matmul %100, %98, %cst_54 {dimension_numbers = #tpu.dot_dimension_numbers<[1], [0], [0], [1], [0, 0, 1, 1], [], []>} : vector<64x64xbf16>, vector<64x256xbf16>, vector<64x256xf32> -> vector<64x256xf32>
    %102 = arith.addf %92, %101 : vector<64x256xf32>
    %c0_55 = arith.constant 0 : index
    %c0_56 = arith.constant 0 : index
    %103 = vector.load %arg3[%c0_55, %c0_56] : memref<64x1xf32, #tpu.memory_space<vmem>>, vector<64x1xf32>
    %104 = vector.broadcast %103 : vector<64x1xf32> to vector<64x256xf32>
    %105 = arith.addf %102, %104 : vector<64x256xf32>
    %cst_57 = arith.constant 0.000000e+00 : f32
    %106 = vector.broadcast %cst_57 : f32 to vector<64x256xf32>
    %107 = arith.maximumf %105, %106 : vector<64x256xf32>
    %cst_58 = arith.constant 0.000000e+00 : bf16
    %108 = vector.broadcast %cst_58 : bf16 to vector<64x128xbf16>
    %c0_59 = arith.constant 0 : index
    %c0_60 = arith.constant 0 : index
    %109 = vector.load %arg7[%c0_59, %c0_60] : memref<64x401xbf16, #tpu.memory_space<vmem>>, vector<64x128xbf16>
    tpu.vector_store %arg7[%c0_59, %c0_60], %108 {strides = array<i32>} : memref<64x401xbf16, #tpu.memory_space<vmem>>, vector<64x128xbf16>,
    %110 = arith.truncf %107 : vector<64x256xf32> to vector<64x256xbf16>
    %c0_61 = arith.constant 0 : index
    %c128_62 = arith.constant 128 : index
    %111 = vector.load %arg7[%c0_61, %c128_62] : memref<64x401xbf16, #tpu.memory_space<vmem>>, vector<64x256xbf16>
    tpu.vector_store %arg7[%c0_61, %c128_62], %110 {strides = array<i32>} : memref<64x401xbf16, #tpu.memory_space<vmem>>, vector<64x256xbf16>,
    %cst_63 = arith.constant 0.000000e+00 : bf16
    %112 = vector.broadcast %cst_63 : bf16 to vector<64x17xbf16>
    %c0_64 = arith.constant 0 : index
    %c384 = arith.constant 384 : index
    %113 = vector.load %arg7[%c0_64, %c384] : memref<64x401xbf16, #tpu.memory_space<vmem>>, vector<64x17xbf16>
    tpu.vector_store %arg7[%c0_64, %c384], %112 {strides = array<i32>} : memref<64x401xbf16, #tpu.memory_space<vmem>>, vector<64x17xbf16>,
    %cst_65 = arith.constant 0.000000e+00 : f32
    %114 = vector.broadcast %cst_65 : f32 to vector<64x256xf32>
    %c0_66 = arith.constant 0 : index
    %c111_67 = arith.constant 111 : index
    %115 = vector.load %arg7[%c0_66, %c111_67] : memref<64x401xbf16, #tpu.memory_space<vmem>>, vector<64x256xbf16>
    %cst_68 = arith.constant 0.000000e+00 : f32
    %116 = arith.truncf %cst_68 : f32 to bf16
    %117 = vector.broadcast %116 : bf16 to vector<64x256xbf16>
    %118 = arith.select %18, %115, %117 : vector<64x256xi1>, vector<64x256xbf16>
    %c0_69 = arith.constant 0 : index
    %c0_70 = arith.constant 0 : index
    %c0_71 = arith.constant 0 : index
    %119 = vector.load %arg4[%c0_69, %c0_70, %c0_71] : memref<9x64x64xbf16, #tpu.memory_space<vmem>>, vector<1x64x64xbf16>
    %120 = vector.shape_cast %119 : vector<1x64x64xbf16> to vector<64x64xbf16>
    %cst_72 = arith.constant dense<0.000000e+00> : vector<64x256xf32>
    %121 = tpu.matmul %120, %118, %cst_72 {dimension_numbers = #tpu.dot_dimension_numbers<[1], [0], [0], [1], [0, 0, 1, 1], [], []>} : vector<64x64xbf16>, vector<64x256xbf16>, vector<64x256xf32> -> vector<64x256xf32>
    %122 = arith.addf %114, %121 : vector<64x256xf32>
    %c0_73 = arith.constant 0 : index
    %c112_74 = arith.constant 112 : index
    %123 = vector.load %arg7[%c0_73, %c112_74] : memref<64x401xbf16, #tpu.memory_space<vmem>>, vector<64x256xbf16>
    %c1_75 = arith.constant 1 : index
    %c0_76 = arith.constant 0 : index
    %c0_77 = arith.constant 0 : index
    %124 = vector.load %arg4[%c1_75, %c0_76, %c0_77] : memref<9x64x64xbf16, #tpu.memory_space<vmem>>, vector<1x64x64xbf16>
    %125 = vector.shape_cast %124 : vector<1x64x64xbf16> to vector<64x64xbf16>
    %cst_78 = arith.constant dense<0.000000e+00> : vector<64x256xf32>
    %126 = tpu.matmul %125, %123, %cst_78 {dimension_numbers = #tpu.dot_dimension_numbers<[1], [0], [0], [1], [0, 0, 1, 1], [], []>} : vector<64x64xbf16>, vector<64x256xbf16>, vector<64x256xf32> -> vector<64x256xf32>
    %127 = arith.addf %122, %126 : vector<64x256xf32>
    %c0_79 = arith.constant 0 : index
    %c113_80 = arith.constant 113 : index
    %128 = vector.load %arg7[%c0_79, %c113_80] : memref<64x401xbf16, #tpu.memory_space<vmem>>, vector<64x256xbf16>
    %cst_81 = arith.constant 0.000000e+00 : f32
    %129 = arith.truncf %cst_81 : f32 to bf16
    %130 = vector.broadcast %129 : bf16 to vector<64x256xbf16>
    %131 = arith.select %20, %128, %130 : vector<64x256xi1>, vector<64x256xbf16>
    %c2_82 = arith.constant 2 : index
    %c0_83 = arith.constant 0 : index
    %c0_84 = arith.constant 0 : index
    %132 = vector.load %arg4[%c2_82, %c0_83, %c0_84] : memref<9x64x64xbf16, #tpu.memory_space<vmem>>, vector<1x64x64xbf16>
    %133 = vector.shape_cast %132 : vector<1x64x64xbf16> to vector<64x64xbf16>
    %cst_85 = arith.constant dense<0.000000e+00> : vector<64x256xf32>
    %134 = tpu.matmul %133, %131, %cst_85 {dimension_numbers = #tpu.dot_dimension_numbers<[1], [0], [0], [1], [0, 0, 1, 1], [], []>} : vector<64x64xbf16>, vector<64x256xbf16>, vector<64x256xf32> -> vector<64x256xf32>
    %135 = arith.addf %127, %134 : vector<64x256xf32>
    %c0_86 = arith.constant 0 : index
    %c127_87 = arith.constant 127 : index
    %136 = vector.load %arg7[%c0_86, %c127_87] : memref<64x401xbf16, #tpu.memory_space<vmem>>, vector<64x256xbf16>
    %cst_88 = arith.constant 0.000000e+00 : f32
    %137 = arith.truncf %cst_88 : f32 to bf16
    %138 = vector.broadcast %137 : bf16 to vector<64x256xbf16>
    %139 = arith.select %18, %136, %138 : vector<64x256xi1>, vector<64x256xbf16>
    %c3_89 = arith.constant 3 : index
    %c0_90 = arith.constant 0 : index
    %c0_91 = arith.constant 0 : index
    %140 = vector.load %arg4[%c3_89, %c0_90, %c0_91] : memref<9x64x64xbf16, #tpu.memory_space<vmem>>, vector<1x64x64xbf16>
    %141 = vector.shape_cast %140 : vector<1x64x64xbf16> to vector<64x64xbf16>
    %cst_92 = arith.constant dense<0.000000e+00> : vector<64x256xf32>
    %142 = tpu.matmul %141, %139, %cst_92 {dimension_numbers = #tpu.dot_dimension_numbers<[1], [0], [0], [1], [0, 0, 1, 1], [], []>} : vector<64x64xbf16>, vector<64x256xbf16>, vector<64x256xf32> -> vector<64x256xf32>
    %143 = arith.addf %135, %142 : vector<64x256xf32>
    %c0_93 = arith.constant 0 : index
    %c128_94 = arith.constant 128 : index
    %144 = vector.load %arg7[%c0_93, %c128_94] : memref<64x401xbf16, #tpu.memory_space<vmem>>, vector<64x256xbf16>
    %c4_95 = arith.constant 4 : index
    %c0_96 = arith.constant 0 : index
    %c0_97 = arith.constant 0 : index
    %145 = vector.load %arg4[%c4_95, %c0_96, %c0_97] : memref<9x64x64xbf16, #tpu.memory_space<vmem>>, vector<1x64x64xbf16>
    %146 = vector.shape_cast %145 : vector<1x64x64xbf16> to vector<64x64xbf16>
    %cst_98 = arith.constant dense<0.000000e+00> : vector<64x256xf32>
    %147 = tpu.matmul %146, %144, %cst_98 {dimension_numbers = #tpu.dot_dimension_numbers<[1], [0], [0], [1], [0, 0, 1, 1], [], []>} : vector<64x64xbf16>, vector<64x256xbf16>, vector<64x256xf32> -> vector<64x256xf32>
    %148 = arith.addf %143, %147 : vector<64x256xf32>
    %c0_99 = arith.constant 0 : index
    %c129_100 = arith.constant 129 : index
    %149 = vector.load %arg7[%c0_99, %c129_100] : memref<64x401xbf16, #tpu.memory_space<vmem>>, vector<64x256xbf16>
    %cst_101 = arith.constant 0.000000e+00 : f32
    %150 = arith.truncf %cst_101 : f32 to bf16
    %151 = vector.broadcast %150 : bf16 to vector<64x256xbf16>
    %152 = arith.select %20, %149, %151 : vector<64x256xi1>, vector<64x256xbf16>
    %c5_102 = arith.constant 5 : index
    %c0_103 = arith.constant 0 : index
    %c0_104 = arith.constant 0 : index
    %153 = vector.load %arg4[%c5_102, %c0_103, %c0_104] : memref<9x64x64xbf16, #tpu.memory_space<vmem>>, vector<1x64x64xbf16>
    %154 = vector.shape_cast %153 : vector<1x64x64xbf16> to vector<64x64xbf16>
    %cst_105 = arith.constant dense<0.000000e+00> : vector<64x256xf32>
    %155 = tpu.matmul %154, %152, %cst_105 {dimension_numbers = #tpu.dot_dimension_numbers<[1], [0], [0], [1], [0, 0, 1, 1], [], []>} : vector<64x64xbf16>, vector<64x256xbf16>, vector<64x256xf32> -> vector<64x256xf32>
    %156 = arith.addf %148, %155 : vector<64x256xf32>
    %c0_106 = arith.constant 0 : index
    %c143_107 = arith.constant 143 : index
    %157 = vector.load %arg7[%c0_106, %c143_107] : memref<64x401xbf16, #tpu.memory_space<vmem>>, vector<64x256xbf16>
    %cst_108 = arith.constant 0.000000e+00 : f32
    %158 = arith.truncf %cst_108 : f32 to bf16
    %159 = vector.broadcast %158 : bf16 to vector<64x256xbf16>
    %160 = arith.select %18, %157, %159 : vector<64x256xi1>, vector<64x256xbf16>
    %c6_109 = arith.constant 6 : index
    %c0_110 = arith.constant 0 : index
    %c0_111 = arith.constant 0 : index
    %161 = vector.load %arg4[%c6_109, %c0_110, %c0_111] : memref<9x64x64xbf16, #tpu.memory_space<vmem>>, vector<1x64x64xbf16>
    %162 = vector.shape_cast %161 : vector<1x64x64xbf16> to vector<64x64xbf16>
    %cst_112 = arith.constant dense<0.000000e+00> : vector<64x256xf32>
    %163 = tpu.matmul %162, %160, %cst_112 {dimension_numbers = #tpu.dot_dimension_numbers<[1], [0], [0], [1], [0, 0, 1, 1], [], []>} : vector<64x64xbf16>, vector<64x256xbf16>, vector<64x256xf32> -> vector<64x256xf32>
    %164 = arith.addf %156, %163 : vector<64x256xf32>
    %c0_113 = arith.constant 0 : index
    %c144_114 = arith.constant 144 : index
    %165 = vector.load %arg7[%c0_113, %c144_114] : memref<64x401xbf16, #tpu.memory_space<vmem>>, vector<64x256xbf16>
    %c7_115 = arith.constant 7 : index
    %c0_116 = arith.constant 0 : index
    %c0_117 = arith.constant 0 : index
    %166 = vector.load %arg4[%c7_115, %c0_116, %c0_117] : memref<9x64x64xbf16, #tpu.memory_space<vmem>>, vector<1x64x64xbf16>
    %167 = vector.shape_cast %166 : vector<1x64x64xbf16> to vector<64x64xbf16>
    %cst_118 = arith.constant dense<0.000000e+00> : vector<64x256xf32>
    %168 = tpu.matmul %167, %165, %cst_118 {dimension_numbers = #tpu.dot_dimension_numbers<[1], [0], [0], [1], [0, 0, 1, 1], [], []>} : vector<64x64xbf16>, vector<64x256xbf16>, vector<64x256xf32> -> vector<64x256xf32>
    %169 = arith.addf %164, %168 : vector<64x256xf32>
    %c0_119 = arith.constant 0 : index
    %c145_120 = arith.constant 145 : index
    %170 = vector.load %arg7[%c0_119, %c145_120] : memref<64x401xbf16, #tpu.memory_space<vmem>>, vector<64x256xbf16>
    %cst_121 = arith.constant 0.000000e+00 : f32
    %171 = arith.truncf %cst_121 : f32 to bf16
    %172 = vector.broadcast %171 : bf16 to vector<64x256xbf16>
    %173 = arith.select %20, %170, %172 : vector<64x256xi1>, vector<64x256xbf16>
    %c8_122 = arith.constant 8 : index
    %c0_123 = arith.constant 0 : index
    %c0_124 = arith.constant 0 : index
    %174 = vector.load %arg4[%c8_122, %c0_123, %c0_124] : memref<9x64x64xbf16, #tpu.memory_space<vmem>>, vector<1x64x64xbf16>
    %175 = vector.shape_cast %174 : vector<1x64x64xbf16> to vector<64x64xbf16>
    %cst_125 = arith.constant dense<0.000000e+00> : vector<64x256xf32>
    %176 = tpu.matmul %175, %173, %cst_125 {dimension_numbers = #tpu.dot_dimension_numbers<[1], [0], [0], [1], [0, 0, 1, 1], [], []>} : vector<64x64xbf16>, vector<64x256xbf16>, vector<64x256xf32> -> vector<64x256xf32>
    %177 = arith.addf %169, %176 : vector<64x256xf32>
    %c0_126 = arith.constant 0 : index
    %c0_127 = arith.constant 0 : index
    %178 = vector.load %arg5[%c0_126, %c0_127] : memref<64x1xf32, #tpu.memory_space<vmem>>, vector<64x1xf32>
    %179 = vector.broadcast %178 : vector<64x1xf32> to vector<64x256xf32>
    %180 = arith.addf %177, %179 : vector<64x256xf32>
    %c0_128 = arith.constant 0 : index
    %c0_129 = arith.constant 0 : index
    %c128_130 = arith.constant 128 : index
    %181 = vector.load %arg1[%c0_128, %c0_129, %c128_130] : memref<1x64x401xf32, #tpu.memory_space<vmem>>, vector<1x64x256xf32>
    %182 = vector.shape_cast %181 : vector<1x64x256xf32> to vector<64x256xf32>
    %183 = arith.addf %182, %180 : vector<64x256xf32>
    %c0_131 = arith.constant 0 : index
    %c0_132 = arith.constant 0 : index
    %c0_133 = arith.constant 0 : index
    %184 = vector.load %arg6[%c0_131, %c0_132, %c0_133] : memref<1x64x256xf32, #tpu.memory_space<vmem>>, vector<1x64x256xf32>
    %185 = vector.shape_cast %184 : vector<1x64x256xf32> to vector<64x256xf32>
    %186 = vector.shape_cast %183 : vector<64x256xf32> to vector<1x64x256xf32>
    tpu.vector_store %arg6[%c0_131, %c0_132, %c0_133], %186 {strides = array<i32>} : memref<1x64x256xf32, #tpu.memory_space<vmem>>, vector<1x64x256xf32>,
    return
  }
  func.func @transform_0(%arg0: i32) -> (i32, i32, i32) {
    %c0_i32 = arith.constant 0 : i32
    %c0_i32_0 = arith.constant 0 : i32
    %c0_i32_1 = arith.constant 0 : i32
    return %arg0, %c0_i32, %c0_i32_0 : i32, i32, i32
  }
  func.func @transform_1(%arg0: i32) -> (i32, i32, i32) {
    %c0_i32 = arith.constant 0 : i32
    %c0_i32_0 = arith.constant 0 : i32
    %c0_i32_1 = arith.constant 0 : i32
    %c0_i32_2 = arith.constant 0 : i32
    return %c0_i32, %c0_i32_0, %c0_i32_1 : i32, i32, i32
  }
  func.func @transform_2(%arg0: i32) -> (i32, i32) {
    %c0_i32 = arith.constant 0 : i32
    %c0_i32_0 = arith.constant 0 : i32
    %c0_i32_1 = arith.constant 0 : i32
    return %c0_i32, %c0_i32_0 : i32, i32
  }
  func.func @transform_3(%arg0: i32) -> (i32, i32, i32) {
    %c0_i32 = arith.constant 0 : i32
    %c0_i32_0 = arith.constant 0 : i32
    %c0_i32_1 = arith.constant 0 : i32
    %c0_i32_2 = arith.constant 0 : i32
    return %c0_i32, %c0_i32_0, %c0_i32_1 : i32, i32, i32
  }
  func.func @transform_4(%arg0: i32) -> (i32, i32) {
    %c0_i32 = arith.constant 0 : i32
    %c0_i32_0 = arith.constant 0 : i32
    %c0_i32_1 = arith.constant 0 : i32
    return %c0_i32, %c0_i32_0 : i32, i32
  }
  func.func @transform_5(%arg0: i32) -> (i32, i32, i32) {
    %c0_i32 = arith.constant 0 : i32
    %c0_i32_0 = arith.constant 0 : i32
    %c0_i32_1 = arith.constant 0 : i32
    return %arg0, %c0_i32, %c0_i32_0 : i32, i32, i32
  }
}

</mosaic_0001>

<bundles_post_ra>
// kernel: residual_block_nobn.1
= control target key start
LH: loop header
LB: loop body
LE: loop exit
PB: predicated region body
PF: predicated region fallthrough
CT: control target
= control target key end

     0   :  { %s4655_s18 = smov 0   ;;  %s6132_s0 = inlined_call_operand.vmem [shape: f32[2,64,401], index: 0, kind: input, shape index: {}]   ;;  %s6133_s1 = inlined_call_operand.vmem [shape: bf16[9,64,64], index: 1, kind: input, shape index: {}]   ;;  %s6134_s2 = inlined_call_operand.vmem [shape: f32[64,1], index: 2, kind: input, shape index: {}]   ;;  %s6135_s3 = inlined_call_operand.vmem [shape: bf16[9,64,64], index: 3, kind: input, shape index: {}]   ;;  %s6136_s4 = inlined_call_operand.vmem [shape: f32[64,1], index: 4, kind: input, shape index: {}]   ;;  %s6137_s5 = inlined_call_operand.vmem [shape: f32[2,64,256], index: 5, kind: output, shape index: {}]  }
   0x1 LB: > { %s3954_s19 = sadd.s32 4294967295, %s4614_s18   ;;  %p3958_p0 = scmp.ge.s32.totalorder %s4614_s18, 1  ;;  %s4614_s18 = sphi %s4655_s18, %s15_s18  }
   0x2   : > { %p187_p1 = scmp.lt.s32.totalorder %s4614_s18, 3 }
   0x4   : > { %p188_p2 = pnand %p3958_p0, %p187_p1 }
   0x5   : > { %v228_v0 = vlaneseq (!%p188_p2)  ;;  %p215_p3 = scmp.lt.s32.totalorder (!%p188_p2), %s3954_s19, 1  ;;  %v4616_v1 = vmov (!%p188_p2), 0   ;;  %s4617_s24 = smov (!%p188_p2), 16   ;;  %vm6147_vm6 = vcmask (!%p188_p2), 138240   ;;  %vm6138_vm7 = vcmask (!%p188_p2), 130048  }
   0x6   : > { %191 = sbr.rel (%p188_p2) target bundleno = 1466 (0x5ba), region = 40  ;;  %2113 = vst [vmem:[#allocation2] sm:$0xff] (!%p188_p2), %v4616_v1  ;;  %461 = vmatprep.mubr.bf16.mxu0 (!%p188_p2), %v4616_v1  ;;  %4512 = vset.pattern.permute.xlu0 (!%p188_p2), %v4616_v1  ;;  %s4618_s25 = smov (!%p188_p2), 111   ;;  %2134 = vst.msk [vmem:[#allocation2 + $0x18] sm:$0xff] (!%p188_p2), %vm6147_vm6, %v4616_v1  ;;  %vm309_vm9 = vcmask (!%p188_p2), 908288   ;;  %vm674_vm14 = vcmask (!%p188_p2), 924672  }
   0x7   : > { %v229_v2 = vand.u32 (!%p188_p2), 127, %v228_v0  ;;  %4513 = vset.pattern.permute.xlu1 (!%p188_p2), %v4616_v1  ;;  %2295 = vmatprep.mubr.bf16.mxu1 (!%p188_p2), %v4616_v1  ;;  %v298_v3 = vshrl.u32 (!%p188_p2), %v228_v0, 7  ;;  %s4619_s26 = smov (!%p188_p2), 113   ;;  %s4620_s27 = smov (!%p188_p2), 127   ;;  %2135 = vst.msk [vmem:[#allocation2 + $0x38] sm:$0xff] (!%p188_p2), %vm6147_vm6, %v4616_v1  ;;  %2136 = vst.msk [vmem:[#allocation2 + $0x58] sm:$0xff] (!%p188_p2), %vm6147_vm6, %v4616_v1 }
   0x8   : > { %2137 = vst.msk [vmem:[#allocation2 + $0x78] sm:$0xff] (!%p188_p2), %vm6147_vm6, %v4616_v1  ;;  %s4621_s28 = smov (!%p188_p2), 17   ;;  %s4622_s29 = smov (!%p188_p2), 15  }
   0x9   : > { %v230_v4 = vadd.s32 (!%p188_p2), 128, %v229_v2  ;;  %v235_v5 = vand.u32 (!%p188_p2), 15, %v229_v2  ;;  %v299_v11 = vsub.s32 (!%p188_p2), 0, %v298_v3  ;;  %v303_v16 = vsub.s32 (!%p188_p2), 4, %v298_v3  ;;  %s4623_s11 = smov (!%p188_p2), 1   ;;  %s4624_s30 = smov (!%p188_p2), 112  }
   0xb   : > { %v242_v6 = vand.u32 (!%p188_p2), 15, %v230_v4  ;;  %vm4676_vm0 = vcmp.ne.s32.totalorder (!%p188_p2), %v235_v5, 0  ;;  %vm4686_vm2 = vcmp.ne.s32.totalorder (!%p188_p2), %v235_v5, 15 }
   0xd   : > { %s6216_s19 = smov (!%p215_p3, %s3954_s19), 1  ;;  %vm256_vm1 = vcmp.ne.s32.totalorder %v242_v6, 0  ;;  %vm4690_vm3 = vcmp.ne.s32.totalorder %v242_v6, 15 }
   0xe   : > { %s4237_s20 = sshll.u32 %s6216_s19, 8  ;;  %vm295_vm4 = vmpackc.low %vm256_vm1, %vm4676_vm0  ;;  %vm416_vm0 = vcmask 523264  }
   0xf   : > { %s4674_s23 = scalar_lea.vmem %s6132_s0, %s4237_s20  ;;  %v296_v18 = vsel %vm295_vm4, 65537, %v4616_v1  ;;  %vm660_vm5 = vmpackc.low %vm4690_vm3, %vm4686_vm2  ;;  %vm6145_vm3 = vcmask 1039360  }
  0x10   : > { %v260_v8 = vld [vmem:[%s4674_s23 + $0x8] sm:$0xff]  ;;  %v261_v10 = vld [vmem:[%s4674_s23 + $0x10] sm:$0xff]  ;;  %v4703_v21 = vrot.slane %v296_v18, %v299_v11  ;;  %v4711_v22 = vrot.slane %v296_v18, %v303_v16  ;;  %v259_v24 = vld [vmem:[%s4674_s23] sm:$0xff]  ;;  %v661_v26 = vsel %vm660_vm5, 65537, %v4616_v1  ;;  %vm6146_vm5 = vcmask 121856  }
  0x11   : > { %v263_v9 = vld [vmem:[%s4674_s23 + $0x28] sm:$0xff]  ;;  %v264_v13 = vld [vmem:[%s4674_s23 + $0x30] sm:$0xff]  ;;  %v262_v25 = vld [vmem:[%s4674_s23 + $0x20] sm:$0xff]  ;;  %v4727_v29 = vrot.slane %v661_v26, %v299_v11  ;;  %v4736_v35 = vrot.slane %v661_v26, %v303_v16 }
  0x12   : > { %v4683_v12 = vpack.c.bf16 %v263_v9, %v260_v8  ;;  %v4698_v17 = vpack.c.bf16 %v264_v13, %v261_v10  ;;  %v266_v19 = vld [vmem:[%s4674_s23 + $0x48] sm:$0xff]  ;;  %305 = vrot.lane.b32.xlu0 %v4703_v21, %s4618_s25  ;;  %v265_v27 = vld [vmem:[%s4674_s23 + $0x40] sm:$0xff]  ;;  %v4723_v28 = vpack.c.bf16 %v262_v25, %v259_v24  ;;  %v267_v31 = vld [vmem:[%s4674_s23 + $0x50] sm:$0xff] }
  0x13   : > { %v269_v20 = vld [vmem:[%s4674_s23 + $0x68] sm:$0xff]  ;;  %v268_v30 = vld [vmem:[%s4674_s23 + $0x60] sm:$0xff]  ;;  %v270_v32 = vld [vmem:[%s4674_s23 + $0x70] sm:$0xff] }
  0x14   : > { %377 = vrot.lane.b32.xlu1 %v4683_v12, %s4617_s24  ;;  %v4715_v23 = vpack.c.bf16 %v269_v20, %v266_v19  ;;  %v273_v33 = vld [vmem:[%s4674_s23 + $0x90] sm:$0xff]  ;;  %v4740_v36 = vpack.c.bf16 %v268_v30, %v265_v27  ;;  %v272_v37 = vld [vmem:[%s4674_s23 + $0x88] sm:$0xff]  ;;  %v4747_v40 = vpack.c.bf16 %v270_v32, %v267_v31  ;;  %v271_v43 = vld [vmem:[%s4674_s23 + $0x80] sm:$0xff] }
  0x15   : > { %v276_v34 = vld [vmem:[%s4674_s23 + $0xb0] sm:$0xff]  ;;  %v275_v38 = vld [vmem:[%s4674_s23 + $0xa8] sm:$0xff]  ;;  %v274_v44 = vld [vmem:[%s4674_s23 + $0xa0] sm:$0xff] }
  0x16   : > { %307 = vrot.lane.b32.xlu0 %v4711_v22, %s4618_s25  ;;  %v278_v39 = vld [vmem:[%s4674_s23 + $0xc8] sm:$0xff]  ;;  %v4751_v41 = vpack.c.bf16 %v276_v34, %v273_v33  ;;  %v277_v45 = vld [vmem:[%s4674_s23 + $0xc0] sm:$0xff]  ;;  %v4760_v47 = vpack.c.bf16 %v275_v38, %v272_v37  ;;  %v279_v49 = vld [vmem:[%s4674_s23 + $0xd0] sm:$0xff]  ;;  %v4770_v51 = vpack.c.bf16 %v274_v44, %v271_v43 }
  0x17   : > { %v281_v42 = vld [vmem:[%s4674_s23 + $0xe8] sm:$0xff]  ;;  %v280_v46 = vld [vmem:[%s4674_s23 + $0xe0] sm:$0xff]  ;;  %v282_v50 = vld [vmem:[%s4674_s23 + $0xf0] sm:$0xff] }
  0x18   : > { %379 = vrot.lane.b32.xlu1 %v4698_v17, %s4617_s24  ;;  %v4764_v48 = vpack.c.bf16 %v281_v42, %v278_v39  ;;  %v4774_v52 = vpack.c.bf16 %v280_v46, %v277_v45  ;;  %v4778_v53 = vpack.c.bf16 %v282_v50, %v279_v49  ;;  %v4534_v43 = vld [vmem:[%s6133_s1 + $0x20] sm:$0xff]   ;;  %v4535_v50 = vld [vmem:[%s6133_s1 + $0x28] sm:$0xff]  }
  0x1a   : > { %375 = vrot.lane.b32.xlu0 %v4723_v28, %s4617_s24 }
  0x1c   : > { %383 = vrot.lane.b32.xlu1 %v4715_v23, %s4617_s24 }
  0x1e   : > { %672 = vrot.lane.b32.xlu0 %v4736_v35, %s4619_s26 }
  0x20   : > { %670 = vrot.lane.b32.xlu1 %v4727_v29, %s4619_s26 }
  0x22   : > { %385 = vrot.lane.b32.xlu0 %v4747_v40, %s4617_s24 }
  0x24   : > { %381 = vrot.lane.b32.xlu1 %v4740_v36, %s4617_s24 }
  0x26   : > { %389 = vrot.lane.b32.xlu0 %v4760_v47, %s4617_s24 }
  0x28   : > { %391 = vrot.lane.b32.xlu1 %v4751_v41, %s4617_s24 }
  0x2a   : > { %387 = vrot.lane.b32.xlu0 %v4770_v51, %s4617_s24 }
  0x2c   : > { %395 = vrot.lane.b32.xlu1 %v4764_v48, %s4617_s24 }
  0x2e   : > { %397 = vrot.lane.b32.xlu0 %v4778_v53, %s4617_s24 }
  0x30   : > { %393 = vrot.lane.b32.xlu1 %v4774_v52, %s4617_s24 }
  0x32   : > { %876 = vrot.lane.b32.xlu0 %v4711_v22, %s4620_s27 }
  0x34   : > { %874 = vrot.lane.b32.xlu1 %v4703_v21, %s4620_s27 }
  0x84   : > { %v4796_v55 = vpop.permute.xlu0 %305 }
  0x85   : > { %vm311_vm8 = vcmp.ne.s16.totalorder %v4796_v55, 0 }
  0x86   : > { %v378_v54 = vpop.permute.xlu1 %377  ;;  %v314_v58 = vsel %vm311_vm8, %v4723_v28, 0  ;;  %v317_v4 = vsel %vm311_vm8, %v4740_v36, 0  ;;  %v320_v9 = vsel %vm311_vm8, %v4770_v51, 0  ;;  %v323_v31 = vsel %vm311_vm8, %v4774_v52, 0 }
  0x87   : > { %534 = vrot.lane.b32.xlu0 %v314_v58, %s4621_s28 }
  0x88   : > { %v4804_v59 = vpop.permute.xlu0 %307 }
  0x89   : > { %v4809_v61 = vsel %vm309_vm9, %v4796_v55, %v4804_v59  ;;  %vm313_vm10 = vcmp.ne.s16.totalorder %v4804_v59, 0 }
  0x8a   : > { %v380_v56 = vpop.permute.xlu1 %379  ;;  %v316_v62 = vsel %vm313_vm10, %v4698_v17, 0  ;;  %v319_v63 = vsel %vm313_vm10, %v4747_v40, 0  ;;  %vm312_vm11 = vcmp.ne.s16.totalorder %v4809_v61, 0  ;;  %v322_v15 = vsel %vm313_vm10, %v4751_v41, 0 }
  0x8b   : > { %v401_v57 = vsel %vm6138_vm7, %v378_v54, %v380_v56  ;;  %538 = vrot.lane.b32.xlu1 %v316_v62, %s4621_s28  ;;  %544 = vrot.lane.b32.xlu0 %v319_v63, %s4621_s28  ;;  %v315_v5 = vsel %vm312_vm11, %v4683_v12, 0  ;;  %v318_v8 = vsel %vm312_vm11, %v4715_v23, 0  ;;  %v321_v16 = vsel %vm312_vm11, %v4760_v47, 0 }
  0x8c   : > { %429 = vmatprep.subr.bf16.mxu0 %v401_v57  ;;  %v376_v0 = vpop.permute.xlu0 %375  ;;  %v324_v24 = vsel %vm312_vm11, %v4764_v48, 0  ;;  %v325_v25 = vsel %vm313_vm10, %v4778_v53, 0 }
  0x8d   : > { %v400_v3 = vsel %vm6138_vm7, %v376_v0, %v378_v54  ;;  %v4536_v0 = vld [vmem:[%s6133_s1 + $0x30] sm:$0xff]  }
  0x8e   : > { %v384_v60 = vpop.permute.xlu1 %383  ;;  %430 = vmatpush1.bf16.msra.mxu0 %v400_v3 }
  0x8f   : > { %540 = vrot.lane.b32.xlu1 %v317_v4, %s4621_s28  ;;  %536 = vrot.lane.b32.xlu0 %v315_v5, %s4621_s28  ;;  %v4537_v5 = vld [vmem:[%s6133_s1 + $0x38] sm:$0xff]  }
  0x90   : > { %v4832_v6 = vpop.permute.xlu0 %672 }
  0x91   : > { %vm678_vm13 = vcmp.ne.s16.totalorder %v4832_v6, 0 }
  0x92   : > { %v4821_v2 = vpop.permute.xlu1 %670  ;;  %v681_v34 = vsel %vm678_vm13, %v4698_v17, 0  ;;  %v684_v37 = vsel %vm678_vm13, %v4747_v40, 0  ;;  %v687_v54 = vsel %vm678_vm13, %v4751_v41, 0 }
  0x93   : > { %542 = vrot.lane.b32.xlu1 %v318_v8, %s4621_s28  ;;  %546 = vrot.lane.b32.xlu0 %v320_v9, %s4621_s28  ;;  %vm676_vm12 = vcmp.ne.s16.totalorder %v4821_v2, 0  ;;  %v4875_v33 = vsel %vm674_vm14, %v4821_v2, %v4832_v6 }
  0x94   : > { %v386_v10 = vpop.permute.xlu0 %385  ;;  %v679_v26 = vsel %vm676_vm12, %v4723_v28, 0  ;;  %vm677_vm15 = vcmp.ne.s16.totalorder %v4875_v33, 0  ;;  %v682_v44 = vsel %vm676_vm12, %v4740_v36, 0  ;;  %v685_v49 = vsel %vm676_vm12, %v4770_v51, 0 }
  0x95   : > { %v403_v13 = vsel %vm6138_vm7, %v384_v60, %v386_v10  ;;  %v680_v45 = vsel %vm677_vm15, %v4683_v12, 0  ;;  %v683_v46 = vsel %vm677_vm15, %v4715_v23, 0  ;;  %v686_v56 = vsel %vm677_vm15, %v4760_v47, 0 }
  0x96   : > { %v382_v7 = vpop.permute.xlu1 %381  ;;  %431 = vmatprep.subr.bf16.mxu0 %v403_v13  ;;  %v689_v58 = vsel %vm677_vm15, %v4764_v48, 0  ;;  %v688_v3 = vsel %vm676_vm12, %v4774_v52, 0 }
  0x97   : > { %v402_v14 = vsel %vm6138_vm7, %v382_v7, %v384_v60  ;;  %550 = vrot.lane.b32.xlu1 %v322_v15, %s4621_s28  ;;  %548 = vrot.lane.b32.xlu0 %v321_v16, %s4621_s28  ;;  %v690_v60 = vsel %vm678_vm13, %v4778_v53, 0 }
  0x98   : > { %432 = vmatpush1.bf16.msra.mxu0 %v402_v14  ;;  %v390_v18 = vpop.permute.xlu0 %389 }
  0x9a   : > { %v392_v11 = vpop.permute.xlu1 %391 }
  0x9b   : > { %v405_v20 = vsel %vm6138_vm7, %v390_v18, %v392_v11  ;;  %554 = vrot.lane.b32.xlu1 %v324_v24, %s4621_s28  ;;  %556 = vrot.lane.b32.xlu0 %v325_v25, %s4621_s28 }
  0x9c   : > { %433 = vmatprep.subr.bf16.mxu0 %v405_v20  ;;  %v388_v27 = vpop.permute.xlu0 %387 }
  0x9d   : > { %v404_v30 = vsel %vm6138_vm7, %v388_v27, %v390_v18 }
  0x9e   : > { %v396_v19 = vpop.permute.xlu1 %395  ;;  %434 = vmatpush1.bf16.msra.mxu0 %v404_v30 }
  0x9f   : > { %552 = vrot.lane.b32.xlu1 %v323_v31, %s4621_s28  ;;  %732 = vrot.lane.b32.xlu0 %v679_v26, %s4622_s29 }
  0xa0   : > { %v398_v38 = vpop.permute.xlu0 %397 }
  0xa1   : > { %v407_v39 = vsel %vm6138_vm7, %v396_v19, %v398_v38 }
  0xa2   : > { %v394_v32 = vpop.permute.xlu1 %393  ;;  %435 = vmatprep.subr.bf16.mxu0 %v407_v39 }
  0xa3   : > { %v406_v42 = vsel %vm6138_vm7, %v394_v32, %v396_v19  ;;  %736 = vrot.lane.b32.xlu1 %v681_v34, %s4622_s29  ;;  %742 = vrot.lane.b32.xlu0 %v684_v37, %s4622_s29 }
  0xa4   : > { %436 = vmatpush1.bf16.msra.mxu0 %v406_v42  ;;  %v4931_v62 = vpop.permute.xlu0 %876 }
  0xa5   : > { %vm6139_vm2 = vcmp.ne.s16.totalorder %v4931_v62, 0 }
  0xa6   : > { %v4918_v57 = vpop.permute.xlu1 %874  ;;  %v885_v4 = vsel %vm6139_vm2, %v4698_v17, 0  ;;  %v888_v7 = vsel %vm6139_vm2, %v4747_v40, 0  ;;  %v894_v14 = vsel %vm6139_vm2, %v4778_v53, 0 }
  0xa7   : > { %738 = vrot.lane.b32.xlu1 %v682_v44, %s4622_s29  ;;  %734 = vrot.lane.b32.xlu0 %v680_v45, %s4622_s29  ;;  %vm6140_vm1 = vcmp.ne.s16.totalorder %v4918_v57, 0  ;;  %v4538_v45 = vld [vmem:[%s6133_s1] sm:$0xff]  }
  0xa8   : > { %3975 = vmatmul.mubr.msk.bf16.vlgmr.msra.gmra.mrb[0].mxu0 %vm416_vm0, %v4534_v43  ;;  %v883_v63 = vsel %vm6140_vm1, %v4723_v28, 0  ;;  %v4958_v28 = vsel %vm6145_vm3, %v4918_v57, %v4931_v62  ;;  %v886_v8 = vsel %vm6140_vm1, %v4740_v36, 0  ;;  %v889_v11 = vsel %vm6140_vm1, %v4770_v51, 0 }
  0xa9   : > { %471 = vmatprep.mubr.bf16.mxu0 %v4616_v1  ;;  %vm6141_vm4 = vcmp.ne.s16.totalorder %v4958_v28, 0  ;;  %v891_v36 = vsel %vm6139_vm2, %v4751_v41, 0  ;;  %v892_v15 = vsel %vm6140_vm1, %v4774_v52, 0  ;;  %vm6142_vm2 = vcmask 7168  }
  0xaa   : > { %v884_v9 = vsel %vm6141_vm4, %v4683_v12, 0  ;;  %v887_v10 = vsel %vm6141_vm4, %v4715_v23, 0  ;;  %v890_v13 = vsel %vm6141_vm4, %v4760_v47, 0  ;;  %v893_v51 = vsel %vm6141_vm4, %v4764_v48, 0 }
  0xab   : > { %740 = vrot.lane.b32.xlu1 %v683_v46, %s4622_s29  ;;  %744 = vrot.lane.b32.xlu0 %v685_v49, %s4622_s29 }
  0xaf   : > { %748 = vrot.lane.b32.xlu1 %v687_v54, %s4622_s29  ;;  %746 = vrot.lane.b32.xlu0 %v686_v56, %s4622_s29 }
  0xb0   : > { %3976 = vmatmul.mubr.msk.bf16.gmra.mrb[4].mxu0 %vm416_vm0, %v4535_v50 }
  0xb1   : > { %481 = vmatprep.mubr.bf16.mxu0 %v4616_v1 }
  0xb3   : > { %752 = vrot.lane.b32.xlu1 %v689_v58, %s4622_s29  ;;  %754 = vrot.lane.b32.xlu0 %v690_v60, %s4622_s29  ;;  %v4539_v60 = vld [vmem:[%s6133_s1 + $0x8] sm:$0xff]  }
  0xb7   : > { %750 = vrot.lane.b32.xlu1 %v688_v3, %s4622_s29  ;;  %936 = vrot.lane.b32.xlu0 %v883_v63, %s4623_s11 }
  0xb8   : > { %3977 = vmatmul.mubr.msk.bf16.gmra.mrb[8].mxu0 %vm416_vm0, %v4536_v0 }
  0xb9   : > { %491 = vmatprep.mubr.bf16.mxu0 %v4616_v1 }
  0xbb   : > { %940 = vrot.lane.b32.xlu1 %v885_v4, %s4623_s11  ;;  %1246 = vrot.lane.b32.xlu0 %v4736_v35, %s4623_s11 }
  0xbf   : > { %1244 = vrot.lane.b32.xlu1 %v4727_v29, %s4623_s11  ;;  %946 = vrot.lane.b32.xlu0 %v888_v7, %s4623_s11 }
  0xc0   : > { %3978 = vmatmul.mubr.msk.bf16.gmra.mrb[12].mxu0 %vm416_vm0, %v4537_v5 }
  0xc1   : > { %619 = vmatprep.mubr.bf16.mxu0 %v4616_v1 }
  0xc3   : > { %942 = vrot.lane.b32.xlu1 %v886_v8, %s4623_s11  ;;  %938 = vrot.lane.b32.xlu0 %v884_v9, %s4623_s11 }
  0xc7   : > { %944 = vrot.lane.b32.xlu1 %v887_v10, %s4623_s11  ;;  %948 = vrot.lane.b32.xlu0 %v889_v11, %s4623_s11  ;;  %v4540_v10 = vld [vmem:[%s6133_s1 + $0x10] sm:$0xff]  }
  0xcb   : > { %952 = vrot.lane.b32.xlu1 %v891_v36, %s4623_s11  ;;  %950 = vrot.lane.b32.xlu0 %v890_v13, %s4623_s11 }
  0xcf   : > { %956 = vrot.lane.b32.xlu1 %v893_v51, %s4623_s11  ;;  %958 = vrot.lane.b32.xlu0 %v894_v14, %s4623_s11  ;;  %v1210_v51 = vld [vmem:[%s4674_s23 + $0x18] sm:$0xff] }
  0xd0   : > { %v1213_v14 = vld [vmem:[%s4674_s23 + $0x38] sm:$0xff] }
  0xd3   : > { %954 = vrot.lane.b32.xlu1 %v892_v15, %s4623_s11  ;;  %1446 = vrot.lane.b32.xlu0 %v4703_v21, %s4622_s29 }
  0xd7   : > { %1448 = vrot.lane.b32.xlu1 %v4711_v22, %s4622_s29 }
  0xf9   : > { %v535_v16 = vpop.permute.xlu0 %534 }
  0xfd   : > { %v539_v18 = vpop.permute.xlu1 %538  ;;  %v545_v19 = vpop.permute.xlu0 %544 }
 0x101   : > { %v541_v20 = vpop.permute.xlu1 %540  ;;  %v537_v24 = vpop.permute.xlu0 %536 }
 0x102   : > { %v560_v25 = vsel %vm6147_vm6, %v537_v24, %v539_v18  ;;  %v559_v26 = vsel %vm6147_vm6, %v535_v16, %v537_v24 }
 0x103   : > { %587 = vmatprep.subr.bf16.mxu0 %v560_v25 }
 0x104   : > { %588 = vmatpush1.bf16.msra.mxu0 %v559_v26 }
 0x105   : > { %v543_v52 = vpop.permute.xlu1 %542  ;;  %v547_v27 = vpop.permute.xlu0 %546 }
 0x106   : > { %v562_v30 = vsel %vm6147_vm6, %v543_v52, %v545_v19  ;;  %v561_v21 = vsel %vm6147_vm6, %v541_v20, %v543_v52  ;;  %v4541_v19 = vld [vmem:[%s6133_s1 + $0x18] sm:$0xff]   ;;  %v5048_v20 = vpack.c.bf16 %v1213_v14, %v1210_v51 }
 0x107   : > { %589 = vmatprep.subr.bf16.mxu0 %v562_v30  ;;  %v1216_v52 = vld [vmem:[%s4674_s23 + $0x58] sm:$0xff] }
 0x108   : > { %590 = vmatpush1.bf16.msra.mxu0 %v561_v21 }
 0x109   : > { %v551_v22 = vpop.permute.xlu1 %550  ;;  %v549_v31 = vpop.permute.xlu0 %548 }
 0x10a   : > { %v564_v32 = vsel %vm6147_vm6, %v549_v31, %v551_v22  ;;  %v563_v34 = vsel %vm6147_vm6, %v547_v27, %v549_v31  ;;  %v1219_v27 = vld [vmem:[%s4674_s23 + $0x78] sm:$0xff]  ;;  %v4542_v31 = vld [vmem:[%s6133_s1 + $0x40] sm:$0xff]  }
 0x10b   : > { %591 = vmatprep.subr.bf16.mxu0 %v564_v32 }
 0x10c   : > { %592 = vmatpush1.bf16.msra.mxu0 %v563_v34 }
 0x10d   : > { %v555_v37 = vpop.permute.xlu1 %554  ;;  %v557_v38 = vpop.permute.xlu0 %556 }
 0x10e   : > { %v566_v39 = vsel %vm6147_vm6, %v555_v37, %v557_v38  ;;  %v1222_v38 = vld [vmem:[%s4674_s23 + $0x98] sm:$0xff] }
 0x10f   : > { %593 = vmatprep.subr.bf16.mxu0 %v566_v39  ;;  %v1225_v39 = vld [vmem:[%s4674_s23 + $0xb8] sm:$0xff] }
 0x111   : > { %v553_v42 = vpop.permute.xlu1 %552  ;;  %v733_v43 = vpop.permute.xlu0 %732 }
 0x112   : > { %v565_v44 = vsel %vm6147_vm6, %v553_v42, %v555_v37  ;;  %v5078_v37 = vpack.c.bf16 %v1219_v27, %v1216_v52  ;;  %v5147_v27 = vld [vmem:[#allocation2] sm:$0xff] }
 0x113   : > { %594 = vmatpush1.bf16.msra.mxu0 %v565_v44 }
 0x115   : > { %v737_v46 = vpop.permute.xlu1 %736  ;;  %v743_v49 = vpop.permute.xlu0 %742 }
 0x116   : > { %3983 = vmatmul.mubr.msk.bf16.vlgmr.msra.gmra.mrb[0].mxu0 %vm416_vm0, %v4538_v45 }
 0x117   : > { %629 = vmatprep.mubr.bf16.mxu0 %v4616_v1 }
 0x119   : > { %v739_v50 = vpop.permute.xlu1 %738  ;;  %v735_v54 = vpop.permute.xlu0 %734 }
 0x11a   : > { %v758_v56 = vsel %vm6146_vm5, %v735_v54, %v737_v46  ;;  %v757_v58 = vsel %vm6146_vm5, %v733_v43, %v735_v54 }
 0x11b   : > { %785 = vmatprep.subr.bf16.mxu0 %v758_v56 }
 0x11c   : > { %786 = vmatpush1.bf16.msra.mxu0 %v757_v58 }
 0x11d   : > { %v741_v63 = vpop.permute.xlu1 %740  ;;  %v745_v0 = vpop.permute.xlu0 %744 }
 0x11e   : > { %v760_v3 = vsel %vm6146_vm5, %v741_v63, %v743_v49  ;;  %3984 = vmatmul.mubr.msk.bf16.gmra.mrb[4].mxu0 %vm416_vm0, %v4539_v60  ;;  %v759_v4 = vsel %vm6146_vm5, %v739_v50, %v741_v63  ;;  %v5094_v50 = vpack.c.bf16 %v1225_v39, %v1222_v38  ;;  %v4543_v63 = vld [vmem:[%s6133_s1 + $0x48] sm:$0xff]  }
 0x11f   : > { %787 = vmatprep.subr.bf16.mxu0 %v760_v3  ;;  %639 = vmatprep.mubr.bf16.mxu0 %v4616_v1 }
 0x120   : > { %788 = vmatpush1.bf16.msra.mxu0 %v759_v4 }
 0x121   : > { %v749_v5 = vpop.permute.xlu1 %748  ;;  %v747_v7 = vpop.permute.xlu0 %746 }
 0x122   : > { %v762_v8 = vsel %vm6146_vm5, %v747_v7, %v749_v5  ;;  %v761_v9 = vsel %vm6146_vm5, %v745_v0, %v747_v7 }
 0x123   : > { %789 = vmatprep.subr.bf16.mxu0 %v762_v8 }
 0x124   : > { %790 = vmatpush1.bf16.msra.mxu0 %v761_v9 }
 0x125   : > { %v753_v11 = vpop.permute.xlu1 %752  ;;  %v755_v36 = vpop.permute.xlu0 %754 }
 0x126   : > { %v764_v13 = vsel %vm6146_vm5, %v753_v11, %v755_v36  ;;  %3985 = vmatmul.mubr.msk.bf16.gmra.mrb[8].mxu0 %vm416_vm0, %v4540_v10  ;;  %v1231_v36 = vld [vmem:[%s4674_s23 + $0xf8] sm:$0xff] }
 0x127   : > { %791 = vmatprep.subr.bf16.mxu0 %v764_v13  ;;  %649 = vmatprep.mubr.bf16.mxu0 %v4616_v1 }
 0x129   : > { %v751_v15 = vpop.permute.xlu1 %750  ;;  %v937_v16 = vpop.permute.xlu0 %936 }
 0x12a   : > { %v763_v18 = vsel %vm6146_vm5, %v751_v15, %v753_v11  ;;  %v1228_v11 = vld [vmem:[%s4674_s23 + $0xd8] sm:$0xff]  ;;  %v4544_v15 = vld [vmem:[%s6133_s1 + $0x50] sm:$0xff]  }
 0x12b   : > { %792 = vmatpush1.bf16.msra.mxu0 %v763_v18  ;;  %v5136_v18 = vpack.c.bf16 %v1231_v36, %v1228_v11 }
 0x12d   : > { %v941_v24 = vpop.permute.xlu1 %940  ;;  %v5050_v25 = vpop.permute.xlu0 %1246 }
 0x12e   : > { %vm6144_vm7 = vcmp.ne.s16.totalorder %v5050_v25, 0  ;;  %3986 = vmatmul.mubr.msk.bf16.gmra.mrb[12].mxu0 %vm416_vm0, %v4541_v19 }
 0x12f   : > { %v1254_v26 = vsel %vm6144_vm7, %v5048_v20, 0  ;;  %817 = vmatprep.mubr.bf16.mxu0 %v4616_v1  ;;  %v1257_v46 = vsel %vm6144_vm7, %v5078_v37, 0  ;;  %v1260_v0 = vsel %vm6144_vm7, %v5094_v50, 0 }
 0x130   : > { %1309 = vrot.lane.b32.xlu1 %v1254_v26, %s4620_s27  ;;  %v1263_v26 = vsel %vm6144_vm7, %v5136_v18, 0 }
 0x131   : > { %v5061_v30 = vpop.permute.xlu1 %1244  ;;  %v947_v21 = vpop.permute.xlu0 %946 }
 0x132   : > { %v5066_v22 = vsel %vm6142_vm2, %v5061_v30, %v5050_v25  ;;  %vm6143_vm1 = vcmp.ne.s16.totalorder %v5061_v30, 0 }
 0x133   : > { %v1252_v32 = vsel %vm6143_vm1, %v4683_v12, 0  ;;  %v1255_v34 = vsel %vm6143_vm1, %v4715_v23, 0  ;;  %vm1250_vm4 = vcmp.ne.s16.totalorder %v5066_v22, 0 }
 0x134   : > { %1305 = vrot.lane.b32.xlu0 %v1252_v32, %s4620_s27  ;;  %1311 = vrot.lane.b32.xlu1 %v1255_v34, %s4620_s27  ;;  %v1256_v49 = vsel %vm1250_vm4, %v4747_v40, 0  ;;  %v1253_v3 = vsel %vm1250_vm4, %v4698_v17, 0  ;;  %v1262_v9 = vsel %vm1250_vm4, %v4778_v53, 0  ;;  %v1259_v10 = vsel %vm1250_vm4, %v4751_v41, 0  ;;  %v4545_v32 = vld [vmem:[%s6133_s1 + $0x58] sm:$0xff]  }
 0x135   : > { %v943_v42 = vpop.permute.xlu1 %942  ;;  %v939_v43 = vpop.permute.xlu0 %938 }
 0x136   : > { %v962_v44 = vsel %vm6142_vm2, %v939_v43, %v941_v24  ;;  %3999 = vmatmul.mubr.msk.bf16.vlgmr.msra.gmra.mrb[0].mxu0 %vm416_vm0, %v4542_v31  ;;  %v961_v45 = vsel %vm6142_vm2, %v937_v16, %v939_v43  ;;  %v1258_v16 = vsel %vm6143_vm1, %v4760_v47, 0 }
 0x137   : > { %989 = vmatprep.subr.bf16.mxu0 %v962_v44  ;;  %827 = vmatprep.mubr.bf16.mxu0 %v4616_v1 }
 0x138   : > { %1315 = vrot.lane.b32.xlu0 %v1257_v46, %s4620_s27  ;;  %1313 = vrot.lane.b32.xlu1 %v1256_v49, %s4620_s27 }
 0x139   : > { %990 = vmatpush1.bf16.msra.mxu0 %v961_v45  ;;  %v945_v54 = vpop.permute.xlu1 %944  ;;  %v949_v56 = vpop.permute.xlu0 %948 }
 0x13a   : > { %v964_v58 = vsel %vm6142_vm2, %v945_v54, %v947_v21  ;;  %v963_v60 = vsel %vm6142_vm2, %v943_v42, %v945_v54  ;;  %v4546_v42 = vld [vmem:[%s6133_s1 + $0x60] sm:$0xff]  }
 0x13b   : > { %991 = vmatprep.subr.bf16.mxu0 %v964_v58 }
 0x13c   : > { %1321 = vrot.lane.b32.xlu1 %v1260_v0, %s4620_s27  ;;  %1307 = vrot.lane.b32.xlu0 %v1253_v3, %s4620_s27  ;;  %v4550_v0 = vld [vmem:[%s6133_s1 + $0x80] sm:$0xff]   ;;  %v4551_v3 = vld [vmem:[%s6133_s1 + $0x88] sm:$0xff]  }
 0x13d   : > { %992 = vmatpush1.bf16.msra.mxu0 %v963_v60  ;;  %v953_v4 = vpop.permute.xlu1 %952  ;;  %v951_v5 = vpop.permute.xlu0 %950 }
 0x13e   : > { %v966_v7 = vsel %vm6142_vm2, %v951_v5, %v953_v4  ;;  %v965_v8 = vsel %vm6142_vm2, %v949_v56, %v951_v5  ;;  %4000 = vmatmul.mubr.msk.bf16.gmra.mrb[4].mxu0 %vm416_vm0, %v4543_v63  ;;  %v4548_v56 = vld [vmem:[%s6133_s1 + $0x70] sm:$0xff]   ;;  %v4549_v63 = vld [vmem:[%s6133_s1 + $0x78] sm:$0xff]  }
 0x13f   : > { %993 = vmatprep.subr.bf16.mxu0 %v966_v7  ;;  %837 = vmatprep.mubr.bf16.mxu0 %v4616_v1  ;;  %v1261_v1 = vsel %vm6143_vm1, %v4764_v48, 0  ;;  %v4552_v4 = vld [vmem:[%s6133_s1 + $0x90] sm:$0xff]   ;;  %v4553_v5 = vld [vmem:[%s6133_s1 + $0x98] sm:$0xff]  }
 0x140   : > { %1325 = vrot.lane.b32.xlu1 %v1262_v9, %s4620_s27  ;;  %1319 = vrot.lane.b32.xlu0 %v1259_v10, %s4620_s27 }
 0x141   : > { %994 = vmatpush1.bf16.msra.mxu0 %v965_v8  ;;  %v957_v13 = vpop.permute.xlu1 %956  ;;  %v959_v51 = vpop.permute.xlu0 %958 }
 0x142   : > { %v968_v14 = vsel %vm6142_vm2, %v957_v13, %v959_v51 }
 0x143   : > { %995 = vmatprep.subr.bf16.mxu0 %v968_v14 }
 0x144   : > { %1323 = vrot.lane.b32.xlu1 %v1261_v1, %s4620_s27  ;;  %1317 = vrot.lane.b32.xlu0 %v1258_v16, %s4620_s27 }
 0x145   : > { %v955_v19 = vpop.permute.xlu1 %954  ;;  %v5145_v52 = vpop.permute.xlu0 %1446 }
 0x146   : > { %v967_v24 = vsel %vm6142_vm2, %v955_v19, %v957_v13  ;;  %4001 = vmatmul.mubr.msk.bf16.gmra.mrb[8].mxu0 %vm416_vm0, %v4544_v15  ;;  %vm6148_vm7 = vcmp.ne.s16.totalorder %v5145_v52, 0 }
 0x147   : > { %996 = vmatpush1.bf16.msra.mxu0 %v967_v24  ;;  %847 = vmatprep.mubr.bf16.mxu0 %v5147_v27  ;;  %v1454_v39 = vsel %vm6148_vm7, %v4683_v12, 0  ;;  %v1460_v54 = vsel %vm6148_vm7, %v4760_v47, 0  ;;  %v1463_v58 = vsel %vm6148_vm7, %v4764_v48, 0 }
 0x148   : > { %1327 = vrot.lane.b32.xlu0 %v1263_v26, %s4620_s27  ;;  %1119 = vmatprep.subr.bf16.mxu0 %v4698_v17 }
 0x149   : > { %v5152_v21 = vpop.permute.xlu1 %1448 }
 0x14a   : > { %vm1453_vm2 = vcmp.ne.s16.totalorder %v5152_v21, 0  ;;  %v5158_v31 = vsel %vm6146_vm5, %v5145_v52, %v5152_v21  ;;  %v4570_v21 = vld [vmem:[%s6135_s3 + $0x20] sm:$0xff]  }
 0x14b   : > { %vm1452_vm1 = vcmp.ne.s16.totalorder %v5158_v31, 0  ;;  %v1456_v34 = vsel %vm1453_vm2, %v5048_v20, 0  ;;  %v1459_v44 = vsel %vm1453_vm2, %v5078_v37, 0  ;;  %v1462_v45 = vsel %vm1453_vm2, %v5094_v50, 0 }
 0x14c   : > { %1511 = vrot.lane.b32.xlu1 %v1456_v34, %s4619_s26  ;;  %v1455_v38 = vsel %vm1452_vm1, %v4698_v17, 0  ;;  %v1458_v43 = vsel %vm1452_vm1, %v4747_v40, 0  ;;  %v1461_v46 = vsel %vm1452_vm1, %v4751_v41, 0  ;;  %v1464_v49 = vsel %vm1452_vm1, %v4778_v53, 0 }
 0x14d   : > { %1509 = vrot.lane.b32.xlu0 %v1455_v38, %s4619_s26  ;;  %v1465_v60 = vsel %vm1453_vm2, %v5136_v18, 0 }
 0x14e   : > { %4002 = vmatmul.mubr.msk.bf16.gmra.mrb[12].mxu0 %vm416_vm0, %v4545_v32 }
 0x14f   : > { %1021 = vmatprep.mubr.bf16.mxu0 %v5147_v27 }
 0x150   : > { %1831 = vrot.lane.b32.xlu1 %v4727_v29, %s4621_s28  ;;  %v1457_v29 = vsel %vm6148_vm7, %v4715_v23, 0  ;;  %vm1713_vm7 = vcmask 916480  }
 0x151   : > { %1507 = vrot.lane.b32.xlu0 %v1454_v39, %s4619_s26 }
 0x154   : > { %1515 = vrot.lane.b32.xlu1 %v1458_v43, %s4619_s26  ;;  %v4554_v43 = vld [vmem:[%s6133_s1 + $0xa0] sm:$0xff]  }
 0x155   : > { %1833 = vrot.lane.b32.xlu0 %v4736_v35, %s4621_s28  ;;  %v4547_v35 = vld [vmem:[%s6133_s1 + $0x68] sm:$0xff]  }
 0x156   : > { %4015 = vmatmul.mubr.msk.bf16.vlgmr.msra.gmra.mrb[0].mxu0 %vm416_vm0, %v4546_v42 }
 0x157   : > { %1031 = vmatprep.mubr.bf16.mxu0 %v5147_v27  ;;  %1120 = vmatpush1.bf16.msra.mxu0 %v4683_v12 }
 0x158   : > { %1513 = vrot.lane.b32.xlu1 %v1457_v29, %s4619_s26  ;;  %1121 = vmatprep.subr.bf16.mxu0 %v4747_v40 }
 0x159   : > { %1517 = vrot.lane.b32.xlu0 %v1459_v44, %s4619_s26 }
 0x15b   : > { %1122 = vmatpush1.bf16.msra.mxu0 %v4715_v23 }
 0x15c   : > { %1523 = vrot.lane.b32.xlu1 %v1462_v45, %s4619_s26  ;;  %1123 = vmatprep.subr.bf16.mxu0 %v4751_v41 }
 0x15d   : > { %1521 = vrot.lane.b32.xlu0 %v1461_v46, %s4619_s26 }
 0x15e   : > { %4016 = vmatmul.mubr.msk.bf16.gmra.mrb[4].mxu0 %vm416_vm0, %v4547_v35 }
 0x15f   : > { %1041 = vmatprep.mubr.bf16.mxu0 %v5147_v27  ;;  %1124 = vmatpush1.bf16.msra.mxu0 %v4760_v47 }
 0x160   : > { %1527 = vrot.lane.b32.xlu1 %v1464_v49, %s4619_s26  ;;  %1125 = vmatprep.subr.bf16.mxu0 %v4778_v53 }
 0x161   : > { %1519 = vrot.lane.b32.xlu0 %v1460_v54, %s4619_s26  ;;  %v4555_v54 = vld [vmem:[%s6133_s1 + $0xa8] sm:$0xff]  }
 0x163   : > { %1126 = vmatpush1.bf16.msra.mxu0 %v4764_v48 }
 0x164   : > { %1525 = vrot.lane.b32.xlu1 %v1463_v58, %s4619_s26 }
 0x165   : > { %1529 = vrot.lane.b32.xlu0 %v1465_v60, %s4619_s26 }
 0x166   : > { %4017 = vmatmul.mubr.msk.bf16.gmra.mrb[8].mxu0 %vm416_vm0, %v4548_v56 }
 0x167   : > { %1051 = vmatprep.mubr.bf16.mxu0 %v5147_v27 }
 0x168   : > { %1693 = vrot.lane.b32.xlu1 %v5048_v20, %s4624_s30 }
 0x169   : > { %1691 = vrot.lane.b32.xlu0 %v4698_v17, %s4624_s30 }
 0x16c   : > { %1697 = vrot.lane.b32.xlu1 %v4747_v40, %s4624_s30 }
 0x16d   : > { %1689 = vrot.lane.b32.xlu0 %v4683_v12, %s4624_s30 }
 0x16e   : > { %4018 = vmatmul.mubr.msk.bf16.gmra.mrb[12].mxu0 %vm416_vm0, %v4549_v63 }
 0x16f   : > { %1151 = vmatprep.mubr.bf16.mxu0 %v5147_v27 }
 0x170   : > { %1695 = vrot.lane.b32.xlu1 %v4715_v23, %s4624_s30 }
 0x171   : > { %1699 = vrot.lane.b32.xlu0 %v5078_v37, %s4624_s30 }
 0x174   : > { %1705 = vrot.lane.b32.xlu1 %v5094_v50, %s4624_s30 }
 0x175   : > { %1703 = vrot.lane.b32.xlu0 %v4751_v41, %s4624_s30 }
 0x176   : > { %4031 = vmatmul.mubr.msk.bf16.vlgmr.msra.gmra.mrb[0].mxu0 %vm416_vm0, %v4550_v0 }
 0x177   : > { %1161 = vmatprep.mubr.bf16.mxu0 %v5147_v27 }
 0x178   : > { %1709 = vrot.lane.b32.xlu1 %v4778_v53, %s4624_s30 }
 0x179   : > { %1701 = vrot.lane.b32.xlu0 %v4760_v47, %s4624_s30 }
 0x17c   : > { %1707 = vrot.lane.b32.xlu1 %v4764_v48, %s4624_s30 }
 0x17d   : > { %1711 = vrot.lane.b32.xlu0 %v5136_v18, %s4624_s30 }
 0x17e   : > { %4032 = vmatmul.mubr.msk.bf16.gmra.mrb[4].mxu0 %vm416_vm0, %v4551_v3 }
 0x17f   : > { %1171 = vmatprep.mubr.bf16.mxu0 %v5147_v27 }
 0x186   : > { %4033 = vmatmul.mubr.msk.bf16.gmra.mrb[8].mxu0 %vm416_vm0, %v4552_v4 }
 0x187   : > { %1181 = vmatprep.mubr.bf16.mxu0 %v5147_v27 }
 0x18e   : > { %4034 = vmatmul.mubr.msk.bf16.gmra.mrb[12].mxu0 %vm416_vm0, %v4553_v5 }
 0x18f   : > { %1389 = vmatprep.mubr.bf16.mxu0 %v5147_v27 }
 0x1a2   : > { %v1310_v7 = vpop.permute.xlu1 %1309 }
 0x1a6   : > { %v1312_v8 = vpop.permute.xlu1 %1311  ;;  %v1306_v9 = vpop.permute.xlu0 %1305 }
 0x1aa   : > { %v1314_v10 = vpop.permute.xlu1 %1313  ;;  %v1316_v11 = vpop.permute.xlu0 %1315 }
 0x1ab   : > { %v1332_v15 = vsel %vm6145_vm3, %v1314_v10, %v1316_v11  ;;  %v1331_v19 = vsel %vm6145_vm3, %v1312_v8, %v1314_v10 }
 0x1ae   : > { %v1322_v36 = vpop.permute.xlu1 %1321  ;;  %v1308_v13 = vpop.permute.xlu0 %1307 }
 0x1af   : > { %v1330_v51 = vsel %vm6145_vm3, %v1308_v13, %v1310_v7  ;;  %v1329_v14 = vsel %vm6145_vm3, %v1306_v9, %v1308_v13 }
 0x1b0   : > { %1357 = vmatprep.subr.bf16.mxu0 %v1330_v51 }
 0x1b1   : > { %1358 = vmatpush1.bf16.msra.mxu0 %v1329_v14  ;;  %v4557_v14 = vld [vmem:[%s6133_s1 + $0xb8] sm:$0xff]  }
 0x1b2   : > { %1359 = vmatprep.subr.bf16.mxu0 %v1332_v15  ;;  %v1320_v1 = vpop.permute.xlu0 %1319  ;;  %v1326_v16 = vpop.permute.xlu1 %1325 }
 0x1b3   : > { %v1334_v24 = vsel %vm6145_vm3, %v1320_v1, %v1322_v36 }
 0x1b5   : > { %1360 = vmatpush1.bf16.msra.mxu0 %v1331_v19 }
 0x1b6   : > { %1361 = vmatprep.subr.bf16.mxu0 %v1334_v24  ;;  %v1318_v26 = vpop.permute.xlu0 %1317  ;;  %v1324_v34 = vpop.permute.xlu1 %1323 }
 0x1b7   : > { %v1333_v32 = vsel %vm6145_vm3, %v1318_v26, %v1320_v1  ;;  %v1335_v42 = vsel %vm6145_vm3, %v1324_v34, %v1326_v16 }
 0x1b9   : > { %1362 = vmatpush1.bf16.msra.mxu0 %v1333_v32  ;;  %v4558_v32 = vld [vmem:[%s6133_s1 + $0xc0] sm:$0xff]  }
 0x1ba   : > { %v1328_v38 = vpop.permute.xlu0 %1327 }
 0x1bb   : > { %v1336_v39 = vsel %vm6145_vm3, %v1326_v16, %v1328_v38 }
 0x1bc   : > { %1363 = vmatprep.subr.bf16.mxu0 %v1336_v39 }
 0x1bd   : > { %1364 = vmatpush1.bf16.msra.mxu0 %v1335_v42 }
 0x1be   : > { %v1512_v29 = vpop.permute.xlu1 %1511 }
 0x1bf   : > { %v1510_v44 = vpop.permute.xlu0 %1509 }
 0x1c0   : > { %v1532_v35 = vsel %vm674_vm14, %v1510_v44, %v1512_v29  ;;  %4047 = vmatmul.mubr.msk.bf16.vlgmr.msra.gmra.mrb[0].mxu0 %vm416_vm0, %v4554_v43 }
 0x1c1   : > { %1559 = vmatprep.subr.bf16.mxu0 %v1532_v35  ;;  %1399 = vmatprep.mubr.bf16.mxu0 %v5147_v27 }
 0x1c2   : > { %v5304_v45 = vpop.permute.xlu1 %1831 }
 0x1c3   : > { %v1508_v46 = vpop.permute.xlu0 %1507 }
 0x1c4   : > { %v1531_v49 = vsel %vm674_vm14, %v1508_v46, %v1510_v44  ;;  %v4559_v44 = vld [vmem:[%s6133_s1 + $0xc8] sm:$0xff]  }
 0x1c5   : > { %1560 = vmatpush1.bf16.msra.mxu0 %v1531_v49 }
 0x1c6   : > { %v1516_v56 = vpop.permute.xlu1 %1515 }
 0x1c7   : > { %v5310_v58 = vpop.permute.xlu0 %1833 }
 0x1c8   : > { %v5315_v60 = vsel %vm6147_vm6, %v5304_v45, %v5310_v58  ;;  %vm1838_vm3 = vcmp.ne.s16.totalorder %v5310_v58, 0  ;;  %4048 = vmatmul.mubr.msk.bf16.gmra.mrb[4].mxu0 %vm416_vm0, %v4555_v54  ;;  %vm1836_vm6 = vcmp.ne.s16.totalorder %v5304_v45, 0  ;;  %v3788_v58 = vld [vmem:[%s6136_s4 + $0x8] sm:$0xff] }
 0x1c9   : > { %vm1837_vm5 = vcmp.ne.s16.totalorder %v5315_v60, 0  ;;  %v1841_v63 = vsel %vm1838_vm3, %v5048_v20, 0  ;;  %1409 = vmatprep.mubr.bf16.mxu0 %v5147_v27  ;;  %v4556_v20 = vld [vmem:[%s6133_s1 + $0xb0] sm:$0xff]   ;;  %v1848_v34 = vsel %vm1836_vm6, %v4764_v48, 0 }
 0x1ca   : > { %v1514_v0 = vpop.permute.xlu1 %1513  ;;  %1896 = vrot.lane.b32.xlu1 %v1841_v63, %s4618_s25  ;;  %v1840_v3 = vsel %vm1837_vm5, %v4698_v17, 0  ;;  %v1843_v8 = vsel %vm1837_vm5, %v4747_v40, 0  ;;  %v1839_v17 = vsel %vm1836_vm6, %v4683_v12, 0  ;;  %v1842_v40 = vsel %vm1836_vm6, %v4715_v23, 0  ;;  %v4560_v63 = vld [vmem:[%s6133_s1 + $0xd0] sm:$0xff]  }
 0x1cb   : > { %1894 = vrot.lane.b32.xlu0 %v1840_v3, %s4618_s25  ;;  %v1518_v4 = vpop.permute.xlu0 %1517  ;;  %v1533_v7 = vsel %vm674_vm14, %v1514_v0, %v1516_v56  ;;  %v1844_v12 = vsel %vm1838_vm3, %v5078_v37, 0  ;;  %v1847_v23 = vsel %vm1838_vm3, %v5094_v50, 0  ;;  %v1846_v37 = vsel %vm1837_vm5, %v4751_v41, 0 }
 0x1cc   : > { %v1534_v5 = vsel %vm674_vm14, %v1516_v56, %v1518_v4  ;;  %v1849_v50 = vsel %vm1837_vm5, %v4778_v53, 0  ;;  %v1845_v41 = vsel %vm1836_vm6, %v4760_v47, 0  ;;  %v1850_v47 = vsel %vm1838_vm3, %v5136_v18, 0 }
 0x1cd   : > { %1561 = vmatprep.subr.bf16.mxu0 %v1534_v5 }
 0x1ce   : > { %v1524_v9 = vpop.permute.xlu1 %1523  ;;  %1900 = vrot.lane.b32.xlu1 %v1843_v8, %s4618_s25  ;;  %1562 = vmatpush1.bf16.msra.mxu0 %v1533_v7  ;;  %v2034_v7 = vld [vmem:[%s6134_s2 + $0x8] sm:$0xff] }
 0x1cf   : > { %1892 = vrot.lane.b32.xlu0 %v1839_v17, %s4618_s25  ;;  %v1522_v10 = vpop.permute.xlu0 %1521  ;;  %v2035_v17 = vld [vmem:[%s6134_s2 + $0x10] sm:$0xff] }
 0x1d0   : > { %v1536_v11 = vsel %vm674_vm14, %v1522_v10, %v1524_v9  ;;  %4049 = vmatmul.mubr.msk.bf16.gmra.mrb[8].mxu0 %vm416_vm0, %v4556_v20  ;;  %v2033_v20 = vld [vmem:[%s6134_s2] sm:$0xff]  ;;  %v2036_v9 = vld [vmem:[%s6134_s2 + $0x18] sm:$0xff] }
 0x1d1   : > { %1563 = vmatprep.subr.bf16.mxu0 %v1536_v11  ;;  %1419 = vmatprep.mubr.bf16.mxu0 %v5147_v27  ;;  %v2038_v11 = vld [vmem:[%s6134_s2 + $0x28] sm:$0xff] }
 0x1d2   : > { %v1528_v36 = vpop.permute.xlu1 %1527  ;;  %1898 = vrot.lane.b32.xlu1 %v1842_v40, %s4618_s25  ;;  %v2037_v40 = vld [vmem:[%s6134_s2 + $0x20] sm:$0xff] }
 0x1d3   : > { %1902 = vrot.lane.b32.xlu0 %v1844_v12, %s4618_s25  ;;  %v1520_v13 = vpop.permute.xlu0 %1519  ;;  %v2039_v12 = vld [vmem:[%s6134_s2 + $0x30] sm:$0xff] }
 0x1d4   : > { %v1535_v51 = vsel %vm674_vm14, %v1520_v13, %v1522_v10  ;;  %v4561_v10 = vld [vmem:[%s6133_s1 + $0xd8] sm:$0xff]   ;;  %v4562_v13 = vld [vmem:[%s6133_s1 + $0xe0] sm:$0xff]  }
 0x1d5   : > { %1564 = vmatpush1.bf16.msra.mxu0 %v1535_v51  ;;  %v4563_v51 = vld [vmem:[%s6133_s1 + $0xe8] sm:$0xff]  }
 0x1d6   : > { %v1526_v15 = vpop.permute.xlu1 %1525  ;;  %1908 = vrot.lane.b32.xlu1 %v1847_v23, %s4618_s25  ;;  %v4565_v23 = vld [vmem:[%s6133_s1 + $0xf8] sm:$0xff]  }
 0x1d7   : > { %1906 = vrot.lane.b32.xlu0 %v1846_v37, %s4618_s25  ;;  %v1530_v1 = vpop.permute.xlu0 %1529  ;;  %v1537_v19 = vsel %vm674_vm14, %v1526_v15, %v1528_v36 }
 0x1d8   : > { %v1538_v16 = vsel %vm674_vm14, %v1528_v36, %v1530_v1  ;;  %4050 = vmatmul.mubr.msk.bf16.gmra.mrb[12].mxu0 %vm416_vm0, %v4557_v14  ;;  %v2040_v36 = vld [vmem:[%s6134_s2 + $0x38] sm:$0xff]  ;;  %v4564_v14 = vld [vmem:[%s6133_s1 + $0xf0] sm:$0xff]  }
 0x1d9   : > { %1565 = vmatprep.subr.bf16.mxu0 %v1538_v16  ;;  %1591 = vmatprep.mubr.bf16.mxu0 %v5147_v27 }
 0x1da   : > { %1912 = vrot.lane.b32.xlu1 %v1849_v50, %s4618_s25  ;;  %1566 = vmatpush1.bf16.msra.mxu0 %v1537_v19  ;;  %v1694_v24 = vpop.permute.xlu1 %1693 }
 0x1db   : > { %1904 = vrot.lane.b32.xlu0 %v1845_v41, %s4618_s25  ;;  %v1692_v26 = vpop.permute.xlu0 %1691 }
 0x1dc   : > { %v1715_v53 = vsel %vm1713_vm7, %v1692_v26, %v1694_v24 }
 0x1dd   : > { %1742 = vmatprep.subr.bf16.mxu0 %v1715_v53 }
 0x1de   : > { %1910 = vrot.lane.b32.xlu1 %v1848_v34, %s4618_s25  ;;  %v1698_v38 = vpop.permute.xlu1 %1697 }
 0x1df   : > { %1914 = vrot.lane.b32.xlu0 %v1850_v47, %s4618_s25  ;;  %v1690_v39 = vpop.permute.xlu0 %1689 }
 0x1e0   : > { %4063 = vmatmul.mubr.msk.bf16.vlgmr.msra.gmra.mrb[0].mxu0 %vm416_vm0, %v4558_v32  ;;  %v1714_v42 = vsel %vm1713_vm7, %v1690_v39, %v1692_v26 }
 0x1e1   : > { %1601 = vmatprep.mubr.bf16.mxu0 %v5147_v27  ;;  %1743 = vmatpush1.bf16.msra.mxu0 %v1714_v42 }
 0x1e2   : > { %v1696_v43 = vpop.permute.xlu1 %1695  ;;  %2048 = vperm.xlu1 %4513, %v2034_v7  }
 0x1e3   : > { %v1700_v48 = vpop.permute.xlu0 %1699  ;;  %v1716_v29 = vsel %vm1713_vm7, %v1696_v43, %v1698_v38  ;;  %2043 = vperm.xlu0 %4512, %v2033_v20  }
 0x1e4   : > { %v1717_v18 = vsel %vm1713_vm7, %v1698_v38, %v1700_v48 }
 0x1e5   : > { %1744 = vmatprep.subr.bf16.mxu0 %v1717_v18  ;;  %v4566_v18 = vld [vmem:[%s6133_s1 + $0x100] sm:$0xff]  }
 0x1e6   : > { %1745 = vmatpush1.bf16.msra.mxu0 %v1716_v29  ;;  %v1706_v35 = vpop.permute.xlu1 %1705  ;;  %2053 = vperm.xlu1 %4513, %v2035_v17  }
 0x1e7   : > { %v1704_v46 = vpop.permute.xlu0 %1703  ;;  %2058 = vperm.xlu0 %4512, %v2036_v9  }
 0x1e8   : > { %4064 = vmatmul.mubr.msk.bf16.gmra.mrb[4].mxu0 %vm416_vm0, %v4559_v44  ;;  %v1719_v49 = vsel %vm1713_vm7, %v1704_v46, %v1706_v35  ;;  %v4567_v35 = vld [vmem:[%s6133_s1 + $0x108] sm:$0xff]  }
 0x1e9   : > { %1611 = vmatprep.mubr.bf16.mxu0 %v5147_v27  ;;  %1746 = vmatprep.subr.bf16.mxu0 %v1719_v49  ;;  %v4569_v49 = vld [vmem:[%s6133_s1 + $0x118] sm:$0xff]  }
 0x1ea   : > { %v1710_v54 = vpop.permute.xlu1 %1709  ;;  %2063 = vperm.xlu1 %4513, %v2037_v40  }
 0x1eb   : > { %v1702_v56 = vpop.permute.xlu0 %1701  ;;  %2068 = vperm.xlu0 %4512, %v2038_v11  }
 0x1ec   : > { %v1718_v0 = vsel %vm1713_vm7, %v1702_v56, %v1704_v46  ;;  %v4568_v46 = vld [vmem:[%s6133_s1 + $0x110] sm:$0xff]  }
 0x1ed   : > { %1747 = vmatpush1.bf16.msra.mxu0 %v1718_v0 }
 0x1ee   : > { %v1708_v3 = vpop.permute.xlu1 %1707  ;;  %2073 = vperm.xlu1 %4513, %v2039_v12  }
 0x1ef   : > { %v1712_v4 = vpop.permute.xlu0 %1711  ;;  %v1720_v5 = vsel %vm1713_vm7, %v1708_v3, %v1710_v54  ;;  %2078 = vperm.xlu0 %4512, %v2040_v36  }
 0x1f0   : > { %4065 = vmatmul.mubr.msk.bf16.gmra.mrb[8].mxu0 %vm416_vm0, %v4560_v63  ;;  %v1721_v8 = vsel %vm1713_vm7, %v1710_v54, %v1712_v4  ;;  %v4514_v54 = vpack.i.bf16 %v5147_v27, %v5147_v27 }
 0x1f1   : > { %1621 = vmatprep.mubr.bf16.mxu0 %v5147_v27  ;;  %1748 = vmatprep.subr.bf16.mxu0 %v1721_v8 }
 0x1f2   : > { %1749 = vmatpush1.bf16.msra.mxu0 %v1720_v5  ;;  %4515 = vrot.lane.b32.xlu1 %v4514_v54, %s4617_s24 }
 0x1f3   : > { %2223 = vrot.lane.b32.xlu0 %v5147_v27, %s4617_s24 }
 0x1f8   : > { %4066 = vmatmul.mubr.msk.bf16.gmra.mrb[12].mxu0 %vm416_vm0, %v4561_v10 }
 0x1f9   : > { %1774 = vmatprep.mubr.bf16.mxu0 %v5147_v27 }
 0x200   : > { %4079 = vmatmul.mubr.msk.bf16.vlgmr.msra.gmra.mrb[0].mxu0 %vm416_vm0, %v4562_v13 }
 0x201   : > { %1784 = vmatprep.mubr.bf16.mxu0 %v5147_v27 }
 0x208   : > { %4080 = vmatmul.mubr.msk.bf16.gmra.mrb[4].mxu0 %vm416_vm0, %v4563_v51 }
 0x209   : > { %1794 = vmatprep.mubr.bf16.mxu0 %v5147_v27 }
 0x210   : > { %4081 = vmatmul.mubr.msk.bf16.gmra.mrb[8].mxu0 %vm416_vm0, %v4564_v14 }
 0x211   : > { %1804 = vmatprep.mubr.bf16.mxu0 %v5147_v27 }
 0x218   : > { %4082 = vmatmul.mubr.msk.bf16.gmra.mrb[12].mxu0 %vm416_vm0, %v4565_v23 }
 0x219   : > { %1976 = vmatprep.mubr.bf16.mxu0 %v5147_v27 }
 0x23c   : > { %v1897_v15 = vpop.permute.xlu1 %1896 }
 0x23d   : > { %v1895_v37 = vpop.permute.xlu0 %1894 }
 0x23e   : > { %v1917_v1 = vsel %vm309_vm9, %v1895_v37, %v1897_v15 }
 0x23f   : > { %1944 = vmatprep.subr.bf16.mxu0 %v1917_v1 }
 0x240   : > { %v1901_v16 = vpop.permute.xlu1 %1900 }
 0x241   : > { %v1893_v19 = vpop.permute.xlu0 %1892 }
 0x242   : > { %v1916_v50 = vsel %vm309_vm9, %v1893_v19, %v1895_v37 }
 0x243   : > { %1945 = vmatpush1.bf16.msra.mxu0 %v1916_v50 }
 0x244   : > { %v1899_v41 = vpop.permute.xlu1 %1898 }
 0x245   : > { %v1903_v24 = vpop.permute.xlu0 %1902  ;;  %v1918_v32 = vsel %vm309_vm9, %v1899_v41, %v1901_v16 }
 0x246   : > { %v1919_v26 = vsel %vm309_vm9, %v1901_v16, %v1903_v24 }
 0x247   : > { %1946 = vmatprep.subr.bf16.mxu0 %v1919_v26 }
 0x248   : > { %v1909_v53 = vpop.permute.xlu1 %1908  ;;  %1947 = vmatpush1.bf16.msra.mxu0 %v1918_v32 }
 0x249   : > { %v1907_v34 = vpop.permute.xlu0 %1906 }
 0x24a   : > { %v1921_v47 = vsel %vm309_vm9, %v1907_v34, %v1909_v53 }
 0x24b   : > { %1948 = vmatprep.subr.bf16.mxu0 %v1921_v47 }
 0x24c   : > { %v1913_v38 = vpop.permute.xlu1 %1912 }
 0x24d   : > { %v1905_v39 = vpop.permute.xlu0 %1904 }
 0x24e   : > { %v1920_v42 = vsel %vm309_vm9, %v1905_v39, %v1907_v34 }
 0x24f   : > { %1949 = vmatpush1.bf16.msra.mxu0 %v1920_v42 }
 0x250   : > { %v1911_v43 = vpop.permute.xlu1 %1910 }
 0x251   : > { %v1915_v48 = vpop.permute.xlu0 %1914  ;;  %v1922_v44 = vsel %vm309_vm9, %v1911_v43, %v1913_v38 }
 0x252   : > { %v1923_v29 = vsel %vm309_vm9, %v1913_v38, %v1915_v48 }
 0x253   : > { %1950 = vmatprep.subr.bf16.mxu0 %v1923_v29 }
 0x254   : > { %1951 = vmatpush1.bf16.msra.mxu0 %v1922_v44 }
 0x257   : > { %4095 = vmatmul.mubr.msk.bf16.vlgmr.msra.gmra.mrb[0].mxu0 %vm416_vm0, %v4566_v18 }
 0x258   : > { %1986 = vmatprep.mubr.bf16.mxu0 %v5147_v27 }
 0x25f   : > { %4096 = vmatmul.mubr.msk.bf16.gmra.mrb[4].mxu0 %vm416_vm0, %v4567_v35 }
 0x260   : > { %1996 = vmatprep.mubr.bf16.mxu0 %v5147_v27 }
 0x261   : > { %v2049_v0 = vpop.permute.xlu1 %2048 }
 0x262   : > { %v2044_v56 = vpop.permute.xlu0 %2043 }
 0x265   : > { %v2054_v13 = vpop.permute.xlu1 %2053 }
 0x266   : > { %v2059_v1 = vpop.permute.xlu0 %2058 }
 0x267   : > { %4097 = vmatmul.mubr.msk.bf16.gmra.mrb[8].mxu0 %vm416_vm0, %v4568_v46 }
 0x268   : > { %2006 = vmatprep.mubr.bf16.mxu0 %v5147_v27 }
 0x269   : > { %v2064_v47 = vpop.permute.xlu1 %2063 }
 0x26a   : > { %v2069_v29 = vpop.permute.xlu0 %2068 }
 0x26f   : > { %4098 = vmatmul.mubr.msk.bf16.gmra.mrb[12].mxu0 %vm416_vm0, %v4569_v49 }
 0x32a   : > { %v1978_v63 = vpop.f32.mrb[0].mxu0 }
 0x32b   : > { %v2081_v3 = vadd.f32 %v2044_v56, %v1978_v63  ;;  %v1980_v4 = vpop.f32.mrb[1].mxu0 }
 0x32c   : > { %v2082_v5 = vadd.f32 %v2044_v56, %v1980_v4  ;;  %v1982_v20 = vpop.f32.mrb[2].mxu0 }
 0x32d   : > { %v2083_v7 = vadd.f32 %v2049_v0, %v1982_v20  ;;  %v1984_v8 = vpop.f32.mrb[3].mxu0  ;;  %v2097_v17 = vmax.f32 %v2081_v3, 0.0  ;;  %v2074_v3 = vpop.permute.xlu1 %2073 }
 0x32e   : > { %v2084_v9 = vadd.f32 %v2049_v0, %v1984_v8  ;;  %v2098_v11 = vmax.f32 %v2082_v5, 0.0 }
 0x32f   : > { %v2099_v10 = vmax.f32 %v2083_v7, 0.0  ;;  %v2079_v7 = vpop.permute.xlu0 %2078 }
 0x330   : > { %v2100_v40 = vmax.f32 %v2084_v9, 0.0 }
 0x331   : > { %v5490_v36 = vpack.c.bf16 %v2099_v10, %v2097_v17 }
 0x332   : > { %v5492_v12 = vpack.c.bf16 %v2100_v40, %v2098_v11  ;;  %v1988_v51 = vpop.f32.mrb[4].mxu0 }
 0x333   : > { %v2085_v14 = vadd.f32 %v2054_v13, %v1988_v51  ;;  %v1990_v23 = vpop.f32.mrb[5].mxu0  ;;  %2213 = vrot.lane.b32.xlu1 %v5490_v36, %s4617_s24 }
 0x334   : > { %v2086_v15 = vadd.f32 %v2054_v13, %v1990_v23  ;;  %v1992_v37 = vpop.f32.mrb[6].mxu0  ;;  %2215 = vrot.lane.b32.xlu0 %v5492_v12, %s4617_s24  ;;  %v2495_v61 = vsel %vm678_vm13, %v5492_v12, 0 }
 0x335   : > { %v2087_v16 = vadd.f32 %v2059_v1, %v1992_v37  ;;  %v1994_v19 = vpop.f32.mrb[7].mxu0  ;;  %v2101_v41 = vmax.f32 %v2085_v14, 0.0  ;;  %v2151_v37 = vsel %vm312_vm11, %v5490_v36, 0 }
 0x336   : > { %v2088_v50 = vadd.f32 %v2059_v1, %v1994_v19  ;;  %v2102_v26 = vmax.f32 %v2086_v15, 0.0  ;;  %v2150_v1 = vsel %vm311_vm8, %v5147_v27, 0  ;;  %vm6155_vm8 = vcmp.ne.s16.totalorder %v4958_v28, 0 }
 0x337   : > { %v2103_v24 = vmax.f32 %v2087_v16, 0.0  ;;  %v2152_v16 = vsel %vm313_vm10, %v5492_v12, 0  ;;  %v4519_v19 = vpack.i.bf16 %v2150_v1, %v2150_v1 }
 0x338   : > { %v2104_v32 = vmax.f32 %v2088_v50, 0.0 }
 0x339   : > { %v5498_v53 = vpack.c.bf16 %v2103_v24, %v2101_v41 }
 0x33a   : > { %v5500_v34 = vpack.c.bf16 %v2104_v32, %v2102_v26  ;;  %v1998_v38 = vpop.f32.mrb[8].mxu0 }
 0x33b   : > { %v2089_v39 = vadd.f32 %v2064_v47, %v1998_v38  ;;  %v2000_v42 = vpop.f32.mrb[9].mxu0  ;;  %2219 = vrot.lane.b32.xlu0 %v5498_v53, %s4617_s24  ;;  %v2154_v50 = vsel %vm312_vm11, %v5498_v53, 0  ;;  %v2493_v38 = vsel %vm676_vm12, %v5147_v27, 0  ;;  %vm6158_vm12 = vmmov %vm6155_vm8 }
 0x33c   : > { %v2090_v43 = vadd.f32 %v2064_v47, %v2000_v42  ;;  %v2002_v48 = vpop.f32.mrb[10].mxu0  ;;  %2221 = vrot.lane.b32.xlu1 %v5500_v34, %s4617_s24  ;;  %v2155_v55 = vsel %vm313_vm10, %v5500_v34, 0  ;;  %v2494_v47 = vsel %vm677_vm15, %v5490_v36, 0  ;;  %v4524_v59 = vpack.i.bf16 %v2493_v38, %v2493_v38 }
 0x33d   : > { %v2091_v44 = vadd.f32 %v2069_v29, %v2002_v48  ;;  %v2004_v18 = vpop.f32.mrb[11].mxu0  ;;  %v2105_v46 = vmax.f32 %v2089_v39, 0.0  ;;  %v2497_v39 = vsel %vm677_vm15, %v5498_v53, 0  ;;  %v2498_v2 = vsel %vm678_vm13, %v5500_v34, 0 }
 0x33e   : > { %v2092_v35 = vadd.f32 %v2069_v29, %v2004_v18  ;;  %v2106_v54 = vmax.f32 %v2090_v43, 0.0 }
 0x33f   : > { %v2107_v49 = vmax.f32 %v2091_v44, 0.0  ;;  %v2688_v44 = vsel %vm6155_vm8, %v5490_v36, 0 }
 0x340   : > { %v2108_v56 = vmax.f32 %v2092_v35, 0.0  ;;  %v2691_v35 = vsel %vm6158_vm12, %v5498_v53, 0 }
 0x341   : > { %v5506_v63 = vpack.c.bf16 %v2107_v49, %v2105_v46 }
 0x342   : > { %v5508_v0 = vpack.c.bf16 %v2108_v56, %v2106_v54  ;;  %v2008_v4 = vpop.f32.mrb[12].mxu0  ;;  %v5638_v56 = vld [vmem:[#allocation2 + $0x18] sm:$0xff] }
 0x343   : > { %v2093_v5 = vadd.f32 %v2074_v3, %v2008_v4  ;;  %v2010_v20 = vpop.f32.mrb[13].mxu0  ;;  %2225 = vrot.lane.b32.xlu0 %v5506_v63, %s4617_s24  ;;  %v2157_v41 = vsel %vm312_vm11, %v5506_v63, 0  ;;  %v2500_v42 = vsel %vm677_vm15, %v5506_v63, 0  ;;  %v3027_v4 = vsel %vm1250_vm4, %v5500_v34, 0 }
 0x344   : > { %v2094_v8 = vadd.f32 %v2074_v3, %v2010_v20  ;;  %v2012_v9 = vpop.f32.mrb[14].mxu0  ;;  %2227 = vrot.lane.b32.xlu1 %v5508_v0, %s4617_s24  ;;  %v2158_v24 = vsel %vm313_vm10, %v5508_v0, 0  ;;  %v2501_v43 = vsel %vm678_vm13, %v5508_v0, 0  ;;  %v3024_v3 = vsel %vm1250_vm4, %v5492_v12, 0 }
 0x345   : > { %v2095_v17 = vadd.f32 %v2079_v7, %v2012_v9  ;;  %v2014_v10 = vpop.f32.mrb[15].mxu0  ;;  %v2109_v40 = vmax.f32 %v2093_v5, 0.0  ;;  %v5655_v5 = vld [vmem:[#allocation2 + $0x38] sm:$0xff]  ;;  %v3030_v9 = vsel %vm1250_vm4, %v5508_v0, 0 }
 0x346   : > { %v2096_v11 = vadd.f32 %v2079_v7, %v2014_v10  ;;  %v2110_v51 = vmax.f32 %v2094_v8, 0.0  ;;  %v5666_v8 = vld [vmem:[#allocation2 + $0x58] sm:$0xff]  ;;  %v4516_v10 = vpop.permute.xlu1 %4515 }
 0x347   : > { %v2111_v13 = vmax.f32 %v2095_v17, 0.0 }
 0x348   : > { %v2112_v14 = vmax.f32 %v2096_v11, 0.0  ;;  %v2224_v11 = vpop.permute.xlu0 %2223 }
 0x349   : > { %v5514_v23 = vpack.c.bf16 %v2111_v13, %v2109_v40 }
 0x34a   : > { %v5516_v15 = vpack.c.bf16 %v2112_v14, %v2110_v51  ;;  %v5683_v51 = vld [vmem:[#allocation2 + $0x78] sm:$0xff]  ;;  %v4517_v14 = vunpack.i.l.bf16 %v4516_v10 }
 0x34b   : > { %2231 = vrot.lane.b32.xlu1 %v5514_v23, %s4617_s24  ;;  %v2160_v26 = vsel %vm312_vm11, %v5514_v23, 0  ;;  %v2503_v48 = vsel %vm677_vm15, %v5514_v23, 0  ;;  %vm6157_vm11 = vcmp.ne.s16.totalorder %v4931_v62, 0  ;;  %vm6160_vm15 = vmmov %vm6155_vm8  ;;  %v3602_v60 = vsel %vm1836_vm6, %v5514_v23, 0 }
 0x34c   : > { %2233 = vrot.lane.b32.xlu0 %v5516_v15, %s4617_s24  ;;  %v2161_v32 = vsel %vm313_vm10, %v5516_v15, 0  ;;  %v2504_v29 = vsel %vm678_vm13, %v5516_v15, 0  ;;  %vm6156_vm10 = vcmp.ne.s16.totalorder %v4918_v57, 0  ;;  %v2689_v33 = vsel %vm6157_vm11, %v5492_v12, 0  ;;  %vm6159_vm13 = vmmov %vm6157_vm11 }
 0x34d   : > { %v2687_v18 = vsel %vm6156_vm10, %v5147_v27, 0  ;;  %v2692_v57 = vsel %vm6159_vm13, %v5500_v34, 0  ;;  %vm6161_vm8 = vmmov %vm6157_vm11  ;;  %vm6165_vm13 = vcmp.ne.s16.totalorder %v5061_v30, 0  ;;  %v3033_v13 = vsel %vm1250_vm4, %v5516_v15, 0 }
 0x34e   : > { %v4529_v6 = vpack.i.bf16 %v2687_v18, %v2687_v18  ;;  %v2695_v46 = vsel %vm6161_vm8, %v5508_v0, 0  ;;  %vm6162_vm10 = vmmov %vm6158_vm12  ;;  %vm6164_vm12 = vcmp.ne.s16.totalorder %v5050_v25, 0  ;;  %v3023_v62 = vsel %vm6165_vm13, %v5490_v36, 0 }
 0x34f   : > { %2229 = vrot.lane.b32.xlu1 %v5147_v27, %s4617_s24  ;;  %v2694_v27 = vsel %vm6160_vm15, %v5506_v63, 0  ;;  %v2697_v49 = vsel %vm6162_vm10, %v5514_v23, 0  ;;  %vm6163_vm11 = vmmov %vm6161_vm8  ;;  %v3025_v28 = vsel %vm6164_vm12, %v5638_v56, 0  ;;  %v3219_v25 = vsel %vm1453_vm2, %v5638_v56, 0  ;;  %s4238_s24 = sshll.u32 %s6216_s19, 7 }
 0x350   : > { %2370 = vrot.lane.b32.xlu0 %v2151_v37, %s4621_s28  ;;  %v2698_v54 = vsel %vm6163_vm11, %v5516_v15, 0  ;;  %vm6166_vm15 = vmmov %vm6164_vm12  ;;  %v4518_v30 = vunpack.i.h.bf16 %v4516_v10 }
 0x351   : > { %v3028_v20 = vsel %vm6166_vm15, %v5655_v5, 0  ;;  %vm6167_vm8 = vmmov %vm6165_vm13  ;;  %vm6172_vm15 = vcmask 130048  }
 0x352   : > { %v3026_v7 = vsel %vm6167_vm8, %v5498_v53, 0  ;;  %vm6168_vm10 = vmmov %vm6164_vm12 }
 0x353   : > { %2372 = vrot.lane.b32.xlu1 %v2152_v16, %s4621_s28  ;;  %v3031_v17 = vsel %vm6168_vm10, %v5666_v8, 0  ;;  %vm6169_vm11 = vmmov %vm6167_vm8 }
 0x354   : > { %4520 = vrot.lane.b32.xlu0 %v4519_v19, %s4621_s28  ;;  %v3029_v40 = vsel %vm6169_vm11, %v5506_v63, 0  ;;  %vm6170_vm12 = vmmov %vm6168_vm10 }
 0x355   : > { %v3034_v16 = vsel %vm6170_vm12, %v5683_v51, 0  ;;  %vm6171_vm13 = vmmov %vm6167_vm8  ;;  %vm6174_vm8 = vcmp.ne.s16.totalorder %v5145_v52, 0 }
 0x356   : > { %v3032_v19 = vsel %vm6171_vm13, %v5514_v23, 0  ;;  %vm6173_vm4 = vmmov %vm6172_vm15 }
 0x357   : > { %2376 = vrot.lane.b32.xlu1 %v2154_v50, %s4621_s28  ;;  %vm6175_vm10 = vmmov %vm6173_vm4 }
 0x358   : > { %2378 = vrot.lane.b32.xlu0 %v2155_v55, %s4621_s28  ;;  %v3218_v55 = vsel %vm1452_vm1, %v5492_v12, 0  ;;  %vm6176_vm11 = vmmov %vm6173_vm4 }
 0x359   : > { %vm6177_vm12 = vmmov %vm6174_vm8 }
 0x35a   : > { %vm6178_vm13 = vmmov %vm6173_vm4 }
 0x35b   : > { %2382 = vrot.lane.b32.xlu1 %v2157_v41, %s4621_s28 }
 0x35c   : > { %2384 = vrot.lane.b32.xlu0 %v2158_v24, %s4621_s28 }
 0x35f   : > { %2380 = vrot.lane.b32.xlu1 %v2150_v1, %s4621_s28 }
 0x360   : > { %2388 = vrot.lane.b32.xlu0 %v2160_v26, %s4621_s28  ;;  %v3217_v26 = vsel %vm6174_vm8, %v5490_v36, 0 }
 0x363   : > { %2390 = vrot.lane.b32.xlu1 %v2161_v32, %s4621_s28  ;;  %v3221_v32 = vsel %vm1452_vm1, %v5500_v34, 0 }
 0x364   : > { %2386 = vrot.lane.b32.xlu0 %v2150_v1, %s4621_s28  ;;  %s6097_s28 = scalar_lea.vmem %s6137_s5, %s4238_s24 }
 0x367   : > { %2548 = vrot.lane.b32.xlu1 %v2494_v47, %s4622_s29 }
 0x368   : > { %2550 = vrot.lane.b32.xlu0 %v2495_v61, %s4622_s29  ;;  %v3222_v61 = vsel %vm1453_vm2, %v5655_v5, 0 }
 0x36b   : > { %4525 = vrot.lane.b32.xlu1 %v4524_v59, %s4622_s29  ;;  %v3220_v59 = vsel %vm6177_vm12, %v5498_v53, 0 }
 0x36c   : > { %2554 = vrot.lane.b32.xlu0 %v2497_v39, %s4622_s29 }
 0x36f   : > { %2556 = vrot.lane.b32.xlu1 %v2498_v2, %s4622_s29 }
 0x370   : > { %2560 = vrot.lane.b32.xlu0 %v2500_v42, %s4622_s29  ;;  %v3224_v42 = vsel %vm1452_vm1, %v5508_v0, 0 }
 0x373   : > { %2562 = vrot.lane.b32.xlu1 %v2501_v43, %s4622_s29  ;;  %v3225_v43 = vsel %vm1453_vm2, %v5666_v8, 0 }
 0x374   : > { %2558 = vrot.lane.b32.xlu0 %v2493_v38, %s4622_s29 }
 0x377   : > { %2566 = vrot.lane.b32.xlu1 %v2503_v48, %s4622_s29 }
 0x378   : > { %2568 = vrot.lane.b32.xlu0 %v2504_v29, %s4622_s29 }
 0x37b   : > { %2564 = vrot.lane.b32.xlu1 %v2493_v38, %s4622_s29 }
 0x37c   : > { %2742 = vrot.lane.b32.xlu0 %v2688_v44, %s4623_s11 }
 0x37f   : > { %2744 = vrot.lane.b32.xlu1 %v2689_v33, %s4623_s11 }
 0x380   : > { %4530 = vrot.lane.b32.xlu0 %v4529_v6, %s4623_s11 }
 0x383   : > { %2748 = vrot.lane.b32.xlu1 %v2691_v35, %s4623_s11  ;;  %v3228_v35 = vsel %vm1453_vm2, %v5683_v51, 0  ;;  %vm6183_vm2 = vcmask 138240  }
 0x384   : > { %2750 = vrot.lane.b32.xlu0 %v2692_v57, %s4623_s11  ;;  %vm6185_vm12 = vmmov %vm6183_vm2 }
 0x387   : > { %2754 = vrot.lane.b32.xlu1 %v2694_v27, %s4623_s11 }
 0x388   : > { %2756 = vrot.lane.b32.xlu0 %v2695_v46, %s4623_s11 }
 0x38b   : > { %2752 = vrot.lane.b32.xlu1 %v2687_v18, %s4623_s11 }
 0x38c   : > { %2760 = vrot.lane.b32.xlu0 %v2697_v49, %s4623_s11 }
 0x38f   : > { %2762 = vrot.lane.b32.xlu1 %v2698_v54, %s4623_s11 }
 0x390   : > { %2758 = vrot.lane.b32.xlu0 %v2687_v18, %s4623_s11  ;;  %v3227_v18 = vsel %vm1452_vm1, %v5516_v15, 0  ;;  %vm6182_vm1 = vmmov %vm6175_vm10 }
 0x393   : > { %3078 = vrot.lane.b32.xlu1 %v3024_v3, %s4620_s27 }
 0x394   : > { %3080 = vrot.lane.b32.xlu0 %v3025_v28, %s4620_s27 }
 0x397   : > { %3076 = vrot.lane.b32.xlu1 %v3023_v62, %s4620_s27  ;;  %v5763_v62 = vld [vmem:[#allocation2] sm:$0xff] }
 0x398   : > { %3084 = vrot.lane.b32.xlu0 %v3027_v4, %s4620_s27 }
 0x39b   : > { %3086 = vrot.lane.b32.xlu1 %v3028_v20, %s4620_s27 }
 0x39c   : > { %3082 = vrot.lane.b32.xlu0 %v3026_v7, %s4620_s27 }
 0x39f   : > { %3090 = vrot.lane.b32.xlu1 %v3030_v9, %s4620_s27 }
 0x3a0   : > { %3092 = vrot.lane.b32.xlu0 %v3031_v17, %s4620_s27  ;;  %v4571_v17 = vld [vmem:[%s6135_s3 + $0x28] sm:$0xff]  }
 0x3a3   : > { %3088 = vrot.lane.b32.xlu1 %v3029_v40, %s4620_s27 }
 0x3a4   : > { %3096 = vrot.lane.b32.xlu0 %v3033_v13, %s4620_s27 }
 0x3a5   : > { %v2214_v37 = vpop.permute.xlu1 %2213 }
 0x3a6   : > { %v2216_v1 = vpop.permute.xlu0 %2215  ;;  %v2235_v50 = vsel %vm6173_vm4, %v4517_v14, %v2214_v37 }
 0x3a7   : > { %3098 = vrot.lane.b32.xlu1 %v3034_v16, %s4620_s27  ;;  %v2236_v22 = vsel %vm6172_vm15, %v2214_v37, %v2216_v1  ;;  %vm6179_vm15 = vmmov %vm6173_vm4 }
 0x3a8   : > { %3094 = vrot.lane.b32.xlu0 %v3032_v19, %s4620_s27  ;;  %2263 = vmatprep.subr.bf16.mxu1 %v2236_v22  ;;  %vm6180_vm4 = vmmov %vm6174_vm8  ;;  %v4572_v19 = vld [vmem:[%s6135_s3 + $0x30] sm:$0xff]  }
 0x3a9   : > { %2264 = vmatpush1.bf16.msra.mxu1 %v2235_v50  ;;  %v3223_v44 = vsel %vm6180_vm4, %v5506_v63, 0  ;;  %vm6181_vm8 = vmmov %vm6180_vm4 }
 0x3aa   : > { %v3226_v57 = vsel %vm6181_vm8, %v5514_v23, 0  ;;  %vm6188_vm4 = vmmov %vm6183_vm2 }
 0x3ab   : > { %3272 = vrot.lane.b32.xlu1 %v3218_v55, %s4619_s26  ;;  %vm6189_vm8 = vmmov %vm6183_vm2 }
 0x3ac   : > { %3274 = vrot.lane.b32.xlu0 %v3219_v25, %s4619_s26 }
 0x3ad   : > { %v2220_v41 = vpop.permute.xlu0 %2219 }
 0x3ae   : > { %v2222_v24 = vpop.permute.xlu1 %2221  ;;  %v2237_v38 = vsel %vm6176_vm11, %v4518_v30, %v2220_v41  ;;  %vm6184_vm11 = vmmov %vm6183_vm2 }
 0x3af   : > { %3270 = vrot.lane.b32.xlu1 %v3217_v26, %s4619_s26  ;;  %v2238_v47 = vsel %vm6175_vm10, %v2220_v41, %v2222_v24  ;;  %v3594_v24 = vsel %vm1837_vm5, %v5492_v12, 0  ;;  %v4573_v26 = vld [vmem:[%s6135_s3 + $0x38] sm:$0xff]  }
 0x3b0   : > { %3278 = vrot.lane.b32.xlu0 %v3221_v32, %s4619_s26  ;;  %2265 = vmatprep.subr.bf16.mxu1 %v2238_v47  ;;  %v3595_v32 = vsel %vm1838_vm3, %v5638_v56, 0 }
 0x3b1   : > { %2266 = vmatpush1.bf16.msra.mxu1 %v2237_v38 }
 0x3b3   : > { %3280 = vrot.lane.b32.xlu1 %v3222_v61, %s4619_s26 }
 0x3b4   : > { %3276 = vrot.lane.b32.xlu0 %v3220_v59, %s4619_s26  ;;  %v3593_v59 = vsel %vm1836_vm6, %v5490_v36, 0 }
 0x3b5   : > { %v2226_v39 = vpop.permute.xlu0 %2225 }
 0x3b6   : > { %v2228_v2 = vpop.permute.xlu1 %2227  ;;  %v2239_v29 = vsel %vm6179_vm15, %v2224_v11, %v2226_v39  ;;  %vm6187_vm15 = vmmov %vm6183_vm2 }
 0x3b7   : > { %3284 = vrot.lane.b32.xlu1 %v3224_v42, %s4619_s26  ;;  %v2240_v48 = vsel %vm6178_vm13, %v2226_v39, %v2228_v2  ;;  %vm6186_vm13 = vmmov %vm6183_vm2  ;;  %v3597_v39 = vsel %vm1837_vm5, %v5500_v34, 0 }
 0x3b8   : > { %3286 = vrot.lane.b32.xlu0 %v3225_v43, %s4619_s26  ;;  %2267 = vmatprep.subr.bf16.mxu1 %v2240_v48  ;;  %v3598_v43 = vsel %vm1838_vm3, %v5655_v5, 0  ;;  %v4574_v48 = vld [vmem:[%s6135_s3] sm:$0xff]  }
 0x3b9   : > { %2268 = vmatpush1.bf16.msra.mxu1 %v2239_v29  ;;  %v3596_v29 = vsel %vm1836_vm6, %v5498_v53, 0 }
 0x3bb   : > { %3282 = vrot.lane.b32.xlu1 %v3223_v44, %s4619_s26 }
 0x3bc   : > { %3290 = vrot.lane.b32.xlu0 %v3227_v18, %s4619_s26 }
 0x3bd   : > { %v2232_v33 = vpop.permute.xlu1 %2231 }
 0x3be   : > { %v2234_v6 = vpop.permute.xlu0 %2233 }
 0x3bf   : > { %3292 = vrot.lane.b32.xlu1 %v3228_v35, %s4619_s26  ;;  %v2242_v27 = vsel %vm6175_vm10, %v2232_v33, %v2234_v6  ;;  %vm6190_vm10 = vmmov %vm6183_vm2 }
 0x3c0   : > { %3288 = vrot.lane.b32.xlu0 %v3226_v57, %s4619_s26  ;;  %2269 = vmatprep.subr.bf16.mxu1 %v2242_v27  ;;  %v3601_v57 = vsel %vm1838_vm3, %v5666_v8, 0 }
 0x3c1   : > { %v2230_v31 = vpop.permute.xlu1 %2229 }
 0x3c2   : > { %v2371_v46 = vpop.permute.xlu0 %2370  ;;  %v2241_v49 = vsel %vm6182_vm1, %v2230_v31, %v2232_v33  ;;  %vm6191_vm1 = vcmask 121856  }
 0x3c3   : > { %3454 = vrot.lane.b32.xlu1 %v5492_v12, %s4624_s30  ;;  %2270 = vmatpush1.bf16.msra.mxu1 %v2241_v49  ;;  %v4575_v49 = vld [vmem:[%s6135_s3 + $0x8] sm:$0xff]  }
 0x3c4   : > { %3456 = vrot.lane.b32.xlu0 %v5638_v56, %s4624_s30 }
 0x3c5   : > { %v2373_v52 = vpop.permute.xlu1 %2372 }
 0x3c6   : > { %4111 = vmatmul.mubr.msk.bf16.vlgmr.msra.gmra.mrb[0].mxu1 %vm416_vm0, %v4570_v21  ;;  %v4521_v54 = vpop.permute.xlu0 %4520  ;;  %v2393_v3 = vsel %vm6183_vm2, %v2371_v46, %v2373_v52  ;;  %vm6192_vm2 = vmmov %vm6191_vm1  ;;  %v3603_v52 = vsel %vm1837_vm5, %v5516_v15, 0 }
 0x3c7   : > { %v4522_v28 = vunpack.i.l.bf16 %v4521_v54  ;;  %3452 = vrot.lane.b32.xlu1 %v5490_v36, %s4624_s30  ;;  %2420 = vmatprep.subr.bf16.mxu1 %v2393_v3  ;;  %v4523_v7 = vunpack.i.h.bf16 %v4521_v54 }
 0x3c8   : > { %3460 = vrot.lane.b32.xlu0 %v5500_v34, %s4624_s30  ;;  %2305 = vmatprep.mubr.bf16.mxu1 %v5763_v62 }
 0x3c9   : > { %v2377_v4 = vpop.permute.xlu1 %2376  ;;  %v2392_v20 = vsel %vm6184_vm11, %v4522_v28, %v2371_v46  ;;  %vm6193_vm11 = vmmov %vm6191_vm1  ;;  %v3599_v46 = vsel %vm1836_vm6, %v5506_v63, 0  ;;  %v3604_v28 = vsel %vm1838_vm3, %v5683_v51, 0 }
 0x3ca   : > { %v2379_v9 = vpop.permute.xlu0 %2378  ;;  %2421 = vmatpush1.bf16.msra.mxu1 %v2392_v20  ;;  %v2394_v40 = vsel %vm6186_vm13, %v4523_v7, %v2377_v4  ;;  %vm6195_vm13 = vmmov %vm6191_vm1  ;;  %v3787_v20 = vld [vmem:[%s6136_s4] sm:$0xff] }
 0x3cb   : > { %3462 = vrot.lane.b32.xlu1 %v5655_v5, %s4624_s30  ;;  %v2395_v10 = vsel %vm6185_vm12, %v2377_v4, %v2379_v9  ;;  %v3600_v5 = vsel %vm1837_vm5, %v5508_v0, 0  ;;  %vm6194_vm12 = vmmov %vm6191_vm1  ;;  %vm6199_vm5 = vcmask 7168  }
 0x3cc   : > { %3458 = vrot.lane.b32.xlu0 %v5498_v53, %s4624_s30  ;;  %2422 = vmatprep.subr.bf16.mxu1 %v2395_v10  ;;  %vm6198_vm3 = vmmov %vm6191_vm1  ;;  %v3789_v10 = vld [vmem:[%s6136_s4 + $0x10] sm:$0xff] }
 0x3cd   : > { %v2383_v11 = vpop.permute.xlu1 %2382  ;;  %vm6200_vm6 = vmmov %vm6199_vm5 }
 0x3ce   : > { %4112 = vmatmul.mubr.msk.bf16.gmra.mrb[4].mxu1 %vm416_vm0, %v4571_v17  ;;  %v2385_v13 = vpop.permute.xlu0 %2384  ;;  %v4576_v17 = vld [vmem:[%s6135_s3 + $0x10] sm:$0xff]  }
 0x3cf   : > { %2423 = vmatpush1.bf16.msra.mxu1 %v2394_v40  ;;  %3466 = vrot.lane.b32.xlu1 %v5508_v0, %s4624_s30  ;;  %v2397_v14 = vsel %vm6187_vm15, %v2383_v11, %v2385_v13  ;;  %vm6196_vm15 = vmmov %vm6191_vm1  ;;  %v3791_v13 = vld [vmem:[%s6136_s4 + $0x20] sm:$0xff] }
 0x3d0   : > { %3468 = vrot.lane.b32.xlu0 %v5666_v8, %s4624_s30  ;;  %2424 = vmatprep.subr.bf16.mxu1 %v2397_v14  ;;  %v3792_v14 = vld [vmem:[%s6136_s4 + $0x28] sm:$0xff] }
 0x3d1   : > { %v2381_v37 = vpop.permute.xlu1 %2380  ;;  %2315 = vmatprep.mubr.bf16.mxu1 %v5763_v62 }
 0x3d2   : > { %v2396_v1 = vsel %vm6188_vm4, %v2381_v37, %v2383_v11  ;;  %v2389_v16 = vpop.permute.xlu0 %2388  ;;  %vm6197_vm4 = vmmov %vm6191_vm1  ;;  %v3790_v11 = vld [vmem:[%s6136_s4 + $0x18] sm:$0xff] }
 0x3d3   : > { %3464 = vrot.lane.b32.xlu1 %v5506_v63, %s4624_s30  ;;  %2425 = vmatpush1.bf16.msra.mxu1 %v2396_v1  ;;  %v4577_v1 = vld [vmem:[%s6135_s3 + $0x18] sm:$0xff]  }
 0x3d4   : > { %3472 = vrot.lane.b32.xlu0 %v5516_v15, %s4624_s30 }
 0x3d5   : > { %v2391_v22 = vpop.permute.xlu1 %2390 }
 0x3d6   : > { %4113 = vmatmul.mubr.msk.bf16.gmra.mrb[8].mxu1 %vm416_vm0, %v4572_v19  ;;  %v2387_v50 = vpop.permute.xlu0 %2386  ;;  %v2399_v55 = vsel %vm6189_vm8, %v2389_v16, %v2391_v22  ;;  %v3794_v22 = vld [vmem:[%s6136_s4 + $0x38] sm:$0xff]  ;;  %vm6201_vm8 = vmmov %vm6199_vm5 }
 0x3d7   : > { %v2398_v25 = vsel %vm6190_vm10, %v2387_v50, %v2389_v16  ;;  %3474 = vrot.lane.b32.xlu1 %v5683_v51, %s4624_s30  ;;  %2426 = vmatprep.subr.bf16.mxu1 %v2399_v55  ;;  %v3793_v16 = vld [vmem:[%s6136_s4 + $0x30] sm:$0xff]  ;;  %vm6202_vm10 = vmmov %vm6199_vm5 }
 0x3d8   : > { %3470 = vrot.lane.b32.xlu0 %v5514_v23, %s4624_s30  ;;  %2427 = vmatpush1.bf16.msra.mxu1 %v2398_v25  ;;  %v4578_v25 = vld [vmem:[%s6135_s3 + $0x40] sm:$0xff]  }
 0x3d9   : > { %v2549_v30 = vpop.permute.xlu1 %2548  ;;  %2325 = vmatprep.mubr.bf16.mxu1 %v5763_v62 }
 0x3da   : > { %v2551_v41 = vpop.permute.xlu0 %2550 }
 0x3db   : > { %3648 = vrot.lane.b32.xlu1 %v3594_v24, %s4618_s25  ;;  %v2571_v47 = vsel %vm6191_vm1, %v2549_v30, %v2551_v41  ;;  %vm6203_vm1 = vmmov %vm6199_vm5 }
 0x3dc   : > { %3650 = vrot.lane.b32.xlu0 %v3595_v32, %s4618_s25  ;;  %2598 = vmatprep.subr.bf16.mxu1 %v2571_v47 }
 0x3dd   : > { %v4526_v38 = vpop.permute.xlu1 %4525 }
 0x3de   : > { %4114 = vmatmul.mubr.msk.bf16.gmra.mrb[12].mxu1 %vm416_vm0, %v4573_v26  ;;  %v2555_v61 = vpop.permute.xlu0 %2554  ;;  %v4527_v2 = vunpack.i.l.bf16 %v4526_v38  ;;  %v4528_v18 = vunpack.i.h.bf16 %v4526_v38 }
 0x3df   : > { %3646 = vrot.lane.b32.xlu1 %v3593_v59, %s4618_s25  ;;  %2452 = vmatprep.mubr.bf16.mxu1 %v5763_v62 }
 0x3e0   : > { %3654 = vrot.lane.b32.xlu0 %v3597_v39, %s4618_s25  ;;  %v2570_v6 = vsel %vm6192_vm2, %v4527_v2, %v2549_v30  ;;  %v2572_v31 = vsel %vm6194_vm12, %v4528_v18, %v2555_v61  ;;  %vm6204_vm2 = vmmov %vm6203_vm1  ;;  %v4582_v18 = vld [vmem:[%s6135_s3 + $0x60] sm:$0xff]  }
 0x3e1   : > { %v2557_v56 = vpop.permute.xlu1 %2556  ;;  %vm6206_vm12 = vmmov %vm6203_vm1 }
 0x3e2   : > { %v2561_v42 = vpop.permute.xlu0 %2560  ;;  %v2573_v35 = vsel %vm6193_vm11, %v2555_v61, %v2557_v56  ;;  %v4579_v61 = vld [vmem:[%s6135_s3 + $0x48] sm:$0xff]   ;;  %vm6205_vm11 = vmmov %vm6203_vm1 }
 0x3e3   : > { %3656 = vrot.lane.b32.xlu1 %v3598_v43, %s4618_s25 }
 0x3e4   : > { %3652 = vrot.lane.b32.xlu0 %v3596_v29, %s4618_s25  ;;  %v4581_v29 = vld [vmem:[%s6135_s3 + $0x58] sm:$0xff]  }
 0x3e5   : > { %v2563_v44 = vpop.permute.xlu1 %2562 }
 0x3e6   : > { %v2559_v33 = vpop.permute.xlu0 %2558  ;;  %4119 = vmatmul.mubr.msk.bf16.vlgmr.msra.gmra.mrb[0].mxu1 %vm416_vm0, %v4574_v48  ;;  %v2575_v8 = vsel %vm6195_vm13, %v2561_v42, %v2563_v44  ;;  %v4580_v48 = vld [vmem:[%s6135_s3 + $0x50] sm:$0xff]   ;;  %vm6207_vm13 = vcmask 1039360  }
 0x3e7   : > { %2599 = vmatpush1.bf16.msra.mxu1 %v2570_v6  ;;  %3660 = vrot.lane.b32.xlu1 %v3600_v5, %s4618_s25  ;;  %v2574_v3 = vsel %vm6196_vm15, %v2559_v33, %v2561_v42  ;;  %v4583_v5 = vld [vmem:[%s6135_s3 + $0x68] sm:$0xff]   ;;  %vm6208_vm15 = vmmov %vm6207_vm13 }
 0x3e8   : > { %2600 = vmatprep.subr.bf16.mxu1 %v2573_v35  ;;  %3662 = vrot.lane.b32.xlu0 %v3601_v57, %s4618_s25 }
 0x3e9   : > { %v2567_v27 = vpop.permute.xlu1 %2566  ;;  %2462 = vmatprep.mubr.bf16.mxu1 %v5763_v62 }
 0x3ea   : > { %v2569_v21 = vpop.permute.xlu0 %2568 }
 0x3eb   : > { %2601 = vmatpush1.bf16.msra.mxu1 %v2572_v31  ;;  %3658 = vrot.lane.b32.xlu1 %v3599_v46, %s4618_s25  ;;  %v2577_v4 = vsel %vm6197_vm4, %v2567_v27, %v2569_v21  ;;  %v4586_v46 = vld [vmem:[%s6135_s3 + $0x80] sm:$0xff]   ;;  %vm6209_vm4 = vmmov %vm6207_vm13 }
 0x3ec   : > { %2602 = vmatprep.subr.bf16.mxu1 %v2575_v8  ;;  %3666 = vrot.lane.b32.xlu0 %v3603_v52, %s4618_s25 }
 0x3ed   : > { %v2565_v54 = vpop.permute.xlu1 %2564 }
 0x3ee   : > { %4120 = vmatmul.mubr.msk.bf16.gmra.mrb[4].mxu1 %vm416_vm0, %v4575_v49  ;;  %v2743_v7 = vpop.permute.xlu0 %2742  ;;  %v2576_v51 = vsel %vm6198_vm3, %v2565_v54, %v2567_v27  ;;  %vm6210_vm3 = vmmov %vm6209_vm4 }
 0x3ef   : > { %2603 = vmatpush1.bf16.msra.mxu1 %v2574_v3  ;;  %3668 = vrot.lane.b32.xlu1 %v3604_v28, %s4618_s25  ;;  %v4587_v3 = vld [vmem:[%s6135_s3 + $0x88] sm:$0xff]  }
 0x3f0   : > { %2604 = vmatprep.subr.bf16.mxu1 %v2577_v4  ;;  %3664 = vrot.lane.b32.xlu0 %v3602_v60, %s4618_s25 }
 0x3f1   : > { %v2745_v9 = vpop.permute.xlu1 %2744  ;;  %2472 = vmatprep.mubr.bf16.mxu1 %v5763_v62 }
 0x3f2   : > { %v2765_v45 = vsel %vm6199_vm5, %v2743_v7, %v2745_v9  ;;  %v4531_v40 = vpop.permute.xlu0 %4530  ;;  %vm6211_vm5 = vmmov %vm6210_vm3 }
 0x3f3   : > { %2605 = vmatpush1.bf16.msra.mxu1 %v2576_v51  ;;  %3797 = vperm.xlu1 %4513, %v3787_v20   ;;  %v4532_v55 = vunpack.i.l.bf16 %v4531_v40  ;;  %v4533_v41 = vunpack.i.h.bf16 %v4531_v40  ;;  %v4588_v51 = vld [vmem:[%s6135_s3 + $0x90] sm:$0xff]   ;;  %v4589_v40 = vld [vmem:[%s6135_s3 + $0x98] sm:$0xff]  }
 0x3f4   : > { %2792 = vmatprep.subr.bf16.mxu1 %v2765_v45  ;;  %3802 = vperm.xlu0 %4512, %v3788_v58  }
 0x3f5   : > { %v2749_v37 = vpop.permute.xlu1 %2748  ;;  %v2764_v26 = vsel %vm6200_vm6, %v4532_v55, %v2743_v7  ;;  %vm6212_vm6 = vmmov %vm6210_vm3 }
 0x3f6   : > { %4121 = vmatmul.mubr.msk.bf16.gmra.mrb[8].mxu1 %vm416_vm0, %v4576_v17  ;;  %v2751_v19 = vpop.permute.xlu0 %2750  ;;  %v2766_v38 = vsel %vm6202_vm10, %v4533_v41, %v2749_v37  ;;  %vm6214_vm10 = vmmov %vm6210_vm3 }
 0x3f7   : > { %3807 = vperm.xlu1 %4513, %v3789_v10   ;;  %2482 = vmatprep.mubr.bf16.mxu1 %v5763_v62  ;;  %v2767_v32 = vsel %vm6201_vm8, %v2749_v37, %v2751_v19  ;;  %vm6213_vm8 = vmmov %vm6210_vm3  ;;  %v4590_v37 = vld [vmem:[%s6135_s3 + $0xa0] sm:$0xff]  }
 0x3f8   : > { %3812 = vperm.xlu0 %4512, %v3790_v11  }
 0x3f9   : > { %v2755_v50 = vpop.permute.xlu1 %2754 }
 0x3fa   : > { %v2757_v30 = vpop.permute.xlu0 %2756 }
 0x3fb   : > { %3817 = vperm.xlu1 %4513, %v3791_v13   ;;  %v2769_v59 = vsel %vm6203_vm1, %v2755_v50, %v2757_v30 }
 0x3fc   : > { %3822 = vperm.xlu0 %4512, %v3792_v14  }
 0x3fd   : > { %v2753_v24 = vpop.permute.xlu1 %2752 }
 0x3fe   : > { %4122 = vmatmul.mubr.msk.bf16.gmra.mrb[12].mxu1 %vm416_vm0, %v4577_v1  ;;  %v2761_v47 = vpop.permute.xlu0 %2760  ;;  %v2768_v56 = vsel %vm6204_vm2, %v2753_v24, %v2755_v50 }
 0x3ff   : > { %3827 = vperm.xlu1 %4513, %v3793_v16   ;;  %2630 = vmatprep.mubr.bf16.mxu1 %v5763_v62 }
 0x400   : > { %3832 = vperm.xlu0 %4512, %v3794_v22  }
 0x401   : > { %v2763_v39 = vpop.permute.xlu1 %2762 }
 0x402   : > { %v2759_v2 = vpop.permute.xlu0 %2758  ;;  %v2771_v42 = vsel %vm6205_vm11, %v2761_v47, %v2763_v39 }
 0x403   : > { %v2770_v43 = vsel %vm6206_vm12, %v2759_v2, %v2761_v47  ;;  %v4593_v2 = vld [vmem:[%s6135_s3 + $0xb8] sm:$0xff]  }
 0x405   : > { %v3079_v44 = vpop.permute.xlu1 %3078 }
 0x406   : > { %4135 = vmatmul.mubr.msk.bf16.vlgmr.msra.gmra.mrb[0].mxu1 %vm416_vm0, %v4578_v25  ;;  %v3081_v33 = vpop.permute.xlu0 %3080  ;;  %v4591_v25 = vld [vmem:[%s6135_s3 + $0xa8] sm:$0xff]  }
 0x407   : > { %2793 = vmatpush1.bf16.msra.mxu1 %v2764_v26  ;;  %2640 = vmatprep.mubr.bf16.mxu1 %v5763_v62 }
 0x408   : > { %2794 = vmatprep.subr.bf16.mxu1 %v2767_v32 }
 0x40a   : > { %v3085_v6 = vpop.permute.xlu0 %3084 }
 0x40b   : > { %2795 = vmatpush1.bf16.msra.mxu1 %v2766_v38 }
 0x40c   : > { %2796 = vmatprep.subr.bf16.mxu1 %v2769_v59 }
 0x40e   : > { %4136 = vmatmul.mubr.msk.bf16.gmra.mrb[4].mxu1 %vm416_vm0, %v4579_v61  ;;  %v4592_v61 = vld [vmem:[%s6135_s3 + $0xb0] sm:$0xff]  }
 0x40f   : > { %2797 = vmatpush1.bf16.msra.mxu1 %v2768_v56  ;;  %2650 = vmatprep.mubr.bf16.mxu1 %v5763_v62 }
 0x410   : > { %2798 = vmatprep.subr.bf16.mxu1 %v2771_v42 }
 0x413   : > { %2799 = vmatpush1.bf16.msra.mxu1 %v2770_v43 }
 0x414   : > { %2922 = vmatprep.subr.bf16.mxu1 %v5492_v12  ;;  %v3077_v12 = vpop.permute.xlu1 %3076 }
 0x415   : > { %v3100_v49 = vsel %vm6208_vm15, %v3077_v12, %v3079_v44 }
 0x416   : > { %4137 = vmatmul.mubr.msk.bf16.gmra.mrb[8].mxu1 %vm416_vm0, %v4580_v48 }
 0x417   : > { %2660 = vmatprep.mubr.bf16.mxu1 %v5763_v62 }
 0x418   : > { %v3087_v35 = vpop.permute.xlu1 %3086 }
 0x419   : > { %v3103_v8 = vsel %vm6209_vm4, %v3085_v6, %v3087_v35  ;;  %v4595_v35 = vld [vmem:[%s6135_s3 + $0xc8] sm:$0xff]  }
 0x41c   : > { %v3091_v57 = vpop.permute.xlu1 %3090 }
 0x41e   : > { %4138 = vmatmul.mubr.msk.bf16.gmra.mrb[12].mxu1 %vm416_vm0, %v4581_v29  ;;  %v4594_v29 = vld [vmem:[%s6135_s3 + $0xc0] sm:$0xff]  }
 0x41f   : > { %2824 = vmatprep.mubr.bf16.mxu1 %v5763_v62 }
 0x426   : > { %4151 = vmatmul.mubr.msk.bf16.vlgmr.msra.gmra.mrb[0].mxu1 %vm416_vm0, %v4582_v18 }
 0x427   : > { %2923 = vmatpush1.bf16.msra.mxu1 %v5490_v36  ;;  %2834 = vmatprep.mubr.bf16.mxu1 %v5763_v62  ;;  %v3083_v36 = vpop.permute.xlu0 %3082 }
 0x428   : > { %2924 = vmatprep.subr.bf16.mxu1 %v5500_v34  ;;  %v4584_v34 = vld [vmem:[%s6135_s3 + $0x70] sm:$0xff]   ;;  %v3102_v54 = vsel %vm6210_vm3, %v3083_v36, %v3085_v6 }
 0x42b   : > { %2925 = vmatpush1.bf16.msra.mxu1 %v5498_v53  ;;  %v3101_v53 = vsel %vm6207_vm13, %v3079_v44, %v3081_v33 }
 0x42c   : > { %2926 = vmatprep.subr.bf16.mxu1 %v5508_v0  ;;  %v3093_v0 = vpop.permute.xlu0 %3092 }
 0x42d   : > { %v3105_v28 = vsel %vm6211_vm5, %v3091_v57, %v3093_v0 }
 0x42e   : > { %4152 = vmatmul.mubr.msk.bf16.gmra.mrb[4].mxu1 %vm416_vm0, %v4583_v5 }
 0x42f   : > { %2927 = vmatpush1.bf16.msra.mxu1 %v5506_v63  ;;  %2844 = vmatprep.mubr.bf16.mxu1 %v5763_v62  ;;  %v3089_v63 = vpop.permute.xlu1 %3088 }
 0x430   : > { %2928 = vmatprep.subr.bf16.mxu1 %v5516_v15  ;;  %v4585_v15 = vld [vmem:[%s6135_s3 + $0x78] sm:$0xff]   ;;  %v3097_v27 = vpop.permute.xlu0 %3096  ;;  %v3104_v60 = vsel %vm6212_vm6, %v3089_v63, %v3091_v57 }
 0x433   : > { %2929 = vmatpush1.bf16.msra.mxu1 %v5514_v23  ;;  %v3099_v23 = vpop.permute.xlu1 %3098 }
 0x434   : > { %3128 = vmatprep.subr.bf16.mxu1 %v3101_v53  ;;  %v3095_v31 = vpop.permute.xlu0 %3094  ;;  %v3107_v7 = vsel %vm6213_vm8, %v3097_v27, %v3099_v23 }
 0x435   : > { %v3106_v9 = vsel %vm6214_vm10, %v3095_v31, %v3097_v27 }
 0x436   : > { %4153 = vmatmul.mubr.msk.bf16.gmra.mrb[8].mxu1 %vm416_vm0, %v4584_v34 }
 0x437   : > { %2854 = vmatprep.mubr.bf16.mxu1 %v5763_v62  ;;  %v3273_v21 = vpop.permute.xlu1 %3272 }
 0x438   : > { %v3275_v52 = vpop.permute.xlu0 %3274 }
 0x439   : > { %v3295_v45 = vsel %vm674_vm14, %v3273_v21, %v3275_v52  ;;  %v4598_v52 = vld [vmem:[%s6135_s3 + $0xe0] sm:$0xff]  }
 0x43b   : > { %v3271_v4 = vpop.permute.xlu1 %3270 }
 0x43c   : > { %v3279_v20 = vpop.permute.xlu0 %3278  ;;  %v3294_v16 = vsel %vm674_vm14, %v3271_v4, %v3273_v21 }
 0x43e   : > { %4154 = vmatmul.mubr.msk.bf16.gmra.mrb[12].mxu1 %vm416_vm0, %v4585_v15  ;;  %v4596_v15 = vld [vmem:[%s6135_s3 + $0xd0] sm:$0xff]  }
 0x43f   : > { %2954 = vmatprep.mubr.bf16.mxu1 %v5763_v62  ;;  %v3281_v58 = vpop.permute.xlu1 %3280 }
 0x440   : > { %v3277_v17 = vpop.permute.xlu0 %3276  ;;  %v3297_v22 = vsel %vm674_vm14, %v3279_v20, %v3281_v58 }
 0x441   : > { %v3296_v50 = vsel %vm674_vm14, %v3277_v17, %v3279_v20 }
 0x443   : > { %v3285_v10 = vpop.permute.xlu1 %3284 }
 0x444   : > { %v3287_v11 = vpop.permute.xlu0 %3286 }
 0x445   : > { %v3299_v30 = vsel %vm674_vm14, %v3285_v10, %v3287_v11  ;;  %v4600_v11 = vld [vmem:[%s6135_s3 + $0xf0] sm:$0xff]  }
 0x446   : > { %4167 = vmatmul.mubr.msk.bf16.vlgmr.msra.gmra.mrb[0].mxu1 %vm416_vm0, %v4586_v46 }
 0x447   : > { %3129 = vmatpush1.bf16.msra.mxu1 %v3100_v49  ;;  %2964 = vmatprep.mubr.bf16.mxu1 %v5763_v62  ;;  %v3283_v13 = vpop.permute.xlu1 %3282  ;;  %v4597_v49 = vld [vmem:[%s6135_s3 + $0xd8] sm:$0xff]  }
 0x448   : > { %3130 = vmatprep.subr.bf16.mxu1 %v3103_v8  ;;  %v3291_v14 = vpop.permute.xlu0 %3290  ;;  %v3298_v24 = vsel %vm674_vm14, %v3283_v13, %v3285_v10  ;;  %v4602_v13 = vld [vmem:[%s6135_s3 + $0x100] sm:$0xff]  }
 0x44b   : > { %3131 = vmatpush1.bf16.msra.mxu1 %v3102_v54  ;;  %v3293_v1 = vpop.permute.xlu1 %3292 }
 0x44c   : > { %3132 = vmatprep.subr.bf16.mxu1 %v3105_v28  ;;  %v3289_v19 = vpop.permute.xlu0 %3288  ;;  %v3301_v26 = vsel %vm674_vm14, %v3291_v14, %v3293_v1  ;;  %v4605_v1 = vld [vmem:[%s6135_s3 + $0x118] sm:$0xff]  }
 0x44d   : > { %v3300_v47 = vsel %vm674_vm14, %v3289_v19, %v3291_v14  ;;  %v4603_v14 = vld [vmem:[%s6135_s3 + $0x108] sm:$0xff]  }
 0x44e   : > { %4168 = vmatmul.mubr.msk.bf16.gmra.mrb[4].mxu1 %vm416_vm0, %v4587_v3 }
 0x44f   : > { %3133 = vmatpush1.bf16.msra.mxu1 %v3104_v60  ;;  %2974 = vmatprep.mubr.bf16.mxu1 %v5763_v62  ;;  %v3455_v55 = vpop.permute.xlu1 %3454 }
 0x450   : > { %3134 = vmatprep.subr.bf16.mxu1 %v3107_v7  ;;  %v3457_v41 = vpop.permute.xlu0 %3456  ;;  %v4599_v7 = vld [vmem:[%s6135_s3 + $0xe8] sm:$0xff]  }
 0x451   : > { %v3477_v59 = vsel %vm1713_vm7, %v3455_v55, %v3457_v41 }
 0x453   : > { %3135 = vmatpush1.bf16.msra.mxu1 %v3106_v9  ;;  %v3453_v32 = vpop.permute.xlu1 %3452 }
 0x454   : > { %3322 = vmatprep.subr.bf16.mxu1 %v3295_v45  ;;  %v3461_v38 = vpop.permute.xlu0 %3460  ;;  %v3476_v18 = vsel %vm1713_vm7, %v3453_v32, %v3455_v55 }
 0x456   : > { %4169 = vmatmul.mubr.msk.bf16.gmra.mrb[8].mxu1 %vm416_vm0, %v4588_v51 }
 0x457   : > { %2984 = vmatprep.mubr.bf16.mxu1 %v5763_v62  ;;  %v3463_v39 = vpop.permute.xlu1 %3462 }
 0x458   : > { %v3459_v56 = vpop.permute.xlu0 %3458  ;;  %v3479_v33 = vsel %vm1713_vm7, %v3461_v38, %v3463_v39 }
 0x459   : > { %v3478_v6 = vsel %vm1713_vm7, %v3459_v56, %v3461_v38  ;;  %v3854_v38 = vld [vmem:[%s4674_s23 + $0x30] sm:$0xff] }
 0x45b   : > { %v3467_v42 = vpop.permute.xlu1 %3466 }
 0x45c   : > { %v3469_v43 = vpop.permute.xlu0 %3468 }
 0x45d   : > { %v3481_v36 = vsel %vm1713_vm7, %v3467_v42, %v3469_v43  ;;  %v3855_v43 = vld [vmem:[%s4674_s23 + $0x48] sm:$0xff] }
 0x45e   : > { %4170 = vmatmul.mubr.msk.bf16.gmra.mrb[12].mxu1 %vm416_vm0, %v4589_v40  ;;  %v4601_v40 = vld [vmem:[%s6135_s3 + $0xf8] sm:$0xff]  }
 0x45f   : > { %3160 = vmatprep.mubr.bf16.mxu1 %v5763_v62  ;;  %v3465_v48 = vpop.permute.xlu1 %3464 }
 0x460   : > { %v3473_v44 = vpop.permute.xlu0 %3472  ;;  %v3480_v34 = vsel %vm1713_vm7, %v3465_v48, %v3467_v42 }
 0x463   : > { %v3475_v12 = vpop.permute.xlu1 %3474 }
 0x464   : > { %v3471_v5 = vpop.permute.xlu0 %3470  ;;  %v3483_v57 = vsel %vm1713_vm7, %v3473_v44, %v3475_v12 }
 0x465   : > { %v3482_v63 = vsel %vm1713_vm7, %v3471_v5, %v3473_v44  ;;  %v3856_v44 = vld [vmem:[%s4674_s23 + $0x50] sm:$0xff] }
 0x466   : > { %4183 = vmatmul.mubr.msk.bf16.vlgmr.msra.gmra.mrb[0].mxu1 %vm416_vm0, %v4590_v37  ;;  %v4604_v37 = vld [vmem:[%s6135_s3 + $0x110] sm:$0xff]  }
 0x467   : > { %3323 = vmatpush1.bf16.msra.mxu1 %v3294_v16  ;;  %3170 = vmatprep.mubr.bf16.mxu1 %v5763_v62  ;;  %v3649_v53 = vpop.permute.xlu1 %3648 }
 0x468   : > { %3324 = vmatprep.subr.bf16.mxu1 %v3297_v22  ;;  %v3651_v0 = vpop.permute.xlu0 %3650  ;;  %v3851_v22 = vld [vmem:[%s4674_s23 + $0x8] sm:$0xff] }
 0x469   : > { %v3671_v27 = vsel %vm309_vm9, %v3649_v53, %v3651_v0 }
 0x46b   : > { %3325 = vmatpush1.bf16.msra.mxu1 %v3296_v50  ;;  %v3647_v23 = vpop.permute.xlu1 %3646 }
 0x46c   : > { %3326 = vmatprep.subr.bf16.mxu1 %v3299_v30  ;;  %v3655_v31 = vpop.permute.xlu0 %3654  ;;  %v3670_v3 = vsel %vm309_vm9, %v3647_v23, %v3649_v53  ;;  %v3859_v23 = vld [vmem:[%s4674_s23 + $0x88] sm:$0xff] }
 0x46e   : > { %4184 = vmatmul.mubr.msk.bf16.gmra.mrb[4].mxu1 %vm416_vm0, %v4591_v25  ;;  %v3852_v25 = vld [vmem:[%s4674_s23 + $0x10] sm:$0xff] }
 0x46f   : > { %3327 = vmatpush1.bf16.msra.mxu1 %v3298_v24  ;;  %3180 = vmatprep.mubr.bf16.mxu1 %v5763_v62  ;;  %v3657_v46 = vpop.permute.xlu1 %3656  ;;  %v3853_v24 = vld [vmem:[%s4674_s23 + $0x28] sm:$0xff] }
 0x470   : > { %3328 = vmatprep.subr.bf16.mxu1 %v3301_v26  ;;  %v3653_v21 = vpop.permute.xlu0 %3652  ;;  %v3673_v4 = vsel %vm309_vm9, %v3655_v31, %v3657_v46 }
 0x471   : > { %v3672_v20 = vsel %vm309_vm9, %v3653_v21, %v3655_v31 }
 0x473   : > { %3329 = vmatpush1.bf16.msra.mxu1 %v3300_v47  ;;  %v3661_v8 = vpop.permute.xlu1 %3660 }
 0x474   : > { %3504 = vmatprep.subr.bf16.mxu1 %v3477_v59  ;;  %v3663_v54 = vpop.permute.xlu0 %3662 }
 0x475   : > { %v3675_v9 = vsel %vm309_vm9, %v3661_v8, %v3663_v54  ;;  %v3861_v54 = vld [vmem:[%s4674_s23 + $0xa8] sm:$0xff] }
 0x476   : > { %4185 = vmatmul.mubr.msk.bf16.gmra.mrb[8].mxu1 %vm416_vm0, %v4592_v61 }
 0x477   : > { %3190 = vmatprep.mubr.bf16.mxu1 %v5763_v62  ;;  %v3659_v28 = vpop.permute.xlu1 %3658 }
 0x478   : > { %v3667_v60 = vpop.permute.xlu0 %3666  ;;  %v3674_v51 = vsel %vm309_vm9, %v3659_v28, %v3661_v8 }
 0x47b   : > { %v3669_v58 = vpop.permute.xlu1 %3668 }
 0x47c   : > { %v3665_v45 = vpop.permute.xlu0 %3664  ;;  %v3677_v17 = vsel %vm309_vm9, %v3667_v60, %v3669_v58 }
 0x47d   : > { %v3676_v10 = vsel %vm309_vm9, %v3665_v45, %v3667_v60  ;;  %v3862_v60 = vld [vmem:[%s4674_s23 + $0xb0] sm:$0xff] }
 0x47e   : > { %4186 = vmatmul.mubr.msk.bf16.gmra.mrb[12].mxu1 %vm416_vm0, %v4593_v2 }
 0x47f   : > { %3354 = vmatprep.mubr.bf16.mxu1 %v5763_v62  ;;  %v3798_v16 = vpop.permute.xlu1 %3797 }
 0x480   : > { %v3803_v30 = vpop.permute.xlu0 %3802 }
 0x483   : > { %v3808_v2 = vpop.permute.xlu1 %3807 }
 0x486   : > { %4199 = vmatmul.mubr.msk.bf16.vlgmr.msra.gmra.mrb[0].mxu1 %vm416_vm0, %v4594_v29 }
 0x487   : > { %3505 = vmatpush1.bf16.msra.mxu1 %v3476_v18  ;;  %3364 = vmatprep.mubr.bf16.mxu1 %v5763_v62  ;;  %v3813_v18 = vpop.permute.xlu0 %3812 }
 0x488   : > { %3506 = vmatprep.subr.bf16.mxu1 %v3479_v33 }
 0x48b   : > { %3507 = vmatpush1.bf16.msra.mxu1 %v3478_v6  ;;  %v3857_v6 = vld [vmem:[%s4674_s23 + $0x68] sm:$0xff]  ;;  %v3823_v21 = vpop.permute.xlu0 %3822 }
 0x48c   : > { %3508 = vmatprep.subr.bf16.mxu1 %v3481_v36 }
 0x48e   : > { %4200 = vmatmul.mubr.msk.bf16.gmra.mrb[4].mxu1 %vm416_vm0, %v4595_v35 }
 0x48f   : > { %3509 = vmatpush1.bf16.msra.mxu1 %v3480_v34  ;;  %3374 = vmatprep.mubr.bf16.mxu1 %v5763_v62  ;;  %v3858_v34 = vld [vmem:[%s4674_s23 + $0x70] sm:$0xff] }
 0x490   : > { %3510 = vmatprep.subr.bf16.mxu1 %v3483_v57 }
 0x493   : > { %3511 = vmatpush1.bf16.msra.mxu1 %v3482_v63 }
 0x494   : > { %3698 = vmatprep.subr.bf16.mxu1 %v3671_v27 }
 0x496   : > { %4201 = vmatmul.mubr.msk.bf16.gmra.mrb[8].mxu1 %vm416_vm0, %v4596_v15  ;;  %v3818_v15 = vpop.permute.xlu1 %3817 }
 0x497   : > { %3384 = vmatprep.mubr.bf16.mxu1 %v5763_v62 }
 0x49e   : > { %4202 = vmatmul.mubr.msk.bf16.gmra.mrb[12].mxu1 %vm416_vm0, %v4597_v49  ;;  %v3860_v49 = vld [vmem:[%s4674_s23 + $0x90] sm:$0xff] }
 0x49f   : > { %3536 = vmatprep.mubr.bf16.mxu1 %v5763_v62 }
 0x4a6   : > { %4215 = vmatmul.mubr.msk.bf16.vlgmr.msra.gmra.mrb[0].mxu1 %vm416_vm0, %v4598_v52 }
 0x4a7   : > { %3699 = vmatpush1.bf16.msra.mxu1 %v3670_v3  ;;  %3546 = vmatprep.mubr.bf16.mxu1 %v5763_v62 }
 0x4a8   : > { %3700 = vmatprep.subr.bf16.mxu1 %v3673_v4 }
 0x4ab   : > { %3701 = vmatpush1.bf16.msra.mxu1 %v3672_v20 }
 0x4ac   : > { %3702 = vmatprep.subr.bf16.mxu1 %v3675_v9 }
 0x4ae   : > { %4216 = vmatmul.mubr.msk.bf16.gmra.mrb[4].mxu1 %vm416_vm0, %v4599_v7 }
 0x4af   : > { %3703 = vmatpush1.bf16.msra.mxu1 %v3674_v51  ;;  %3556 = vmatprep.mubr.bf16.mxu1 %v5763_v62  ;;  %v3828_v51 = vpop.permute.xlu1 %3827 }
 0x4b0   : > { %3704 = vmatprep.subr.bf16.mxu1 %v3677_v17  ;;  %v3863_v17 = vld [vmem:[%s4674_s23 + $0xc8] sm:$0xff] }
 0x4b3   : > { %3705 = vmatpush1.bf16.msra.mxu1 %v3676_v10 }
 0x4b6   : > { %4217 = vmatmul.mubr.msk.bf16.gmra.mrb[8].mxu1 %vm416_vm0, %v4600_v11 }
 0x4b7   : > { %3566 = vmatprep.mubr.bf16.mxu1 %v5763_v62 }
 0x4be   : > { %4218 = vmatmul.mubr.msk.bf16.gmra.mrb[12].mxu1 %vm416_vm0, %v4601_v40  ;;  %v3864_v40 = vld [vmem:[%s4674_s23 + $0xd0] sm:$0xff] }
 0x4bf   : > { %3730 = vmatprep.mubr.bf16.mxu1 %v5763_v62 }
 0x4c6   : > { %4231 = vmatmul.mubr.msk.bf16.vlgmr.msra.gmra.mrb[0].mxu1 %vm416_vm0, %v4602_v13  ;;  %v3833_v13 = vpop.permute.xlu0 %3832 }
 0x4c7   : > { %3740 = vmatprep.mubr.bf16.mxu1 %v5763_v62 }
 0x4ce   : > { %4232 = vmatmul.mubr.msk.bf16.gmra.mrb[4].mxu1 %vm416_vm0, %v4603_v14 }
 0x4cf   : > { %3750 = vmatprep.mubr.bf16.mxu1 %v5763_v62 }
 0x4d6   : > { %4233 = vmatmul.mubr.msk.bf16.gmra.mrb[8].mxu1 %vm416_vm0, %v4604_v37 }
 0x4d7   : > { %3760 = vmatprep.mubr.bf16.mxu1 %v5763_v62 }
 0x4de   : > { %4234 = vmatmul.mubr.msk.bf16.gmra.mrb[12].mxu1 %vm416_vm0, %v4605_v1  ;;  %v3865_v1 = vld [vmem:[%s4674_s23 + $0xe8] sm:$0xff] }
 0x599   : > { %v3732_v19 = vpop.f32.mrb[0].mxu1 }
 0x59a   : > { %v3835_v50 = vadd.f32 %v3798_v16, %v3732_v19  ;;  %v3734_v55 = vpop.f32.mrb[1].mxu1 }
 0x59b   : > { %v3836_v62 = vadd.f32 %v3798_v16, %v3734_v55  ;;  %v3736_v41 = vpop.f32.mrb[2].mxu1 }
 0x59c   : > { %v3867_v26 = vadd.f32 %v3851_v22, %v3835_v50  ;;  %v3837_v32 = vadd.f32 %v3803_v30, %v3736_v41  ;;  %v3738_v47 = vpop.f32.mrb[3].mxu1  ;;  %v3866_v50 = vld [vmem:[%s4674_s23 + $0xf0] sm:$0xff] }
 0x59d   : > { %v3868_v61 = vadd.f32 %v3852_v25, %v3836_v62  ;;  %v3838_v59 = vadd.f32 %v3803_v30, %v3738_v47 }
 0x59e   : > { %3883 = vst [vmem:[%s6097_s28] sm:$0xff] %v3867_v26  ;;  %v3869_v39 = vadd.f32 %v3853_v24, %v3837_v32 }
 0x59f   : > { %3884 = vst [vmem:[%s6097_s28 + $0x8] sm:$0xff] %v3868_v61  ;;  %v3870_v56 = vadd.f32 %v3854_v38, %v3838_v59 }
 0x5a0   : > { %3885 = vst [vmem:[%s6097_s28 + $0x10] sm:$0xff] %v3869_v39 }
 0x5a1   : > { %3886 = vst [vmem:[%s6097_s28 + $0x18] sm:$0xff] %v3870_v56  ;;  %v3742_v42 = vpop.f32.mrb[4].mxu1 }
 0x5a2   : > { %v3839_v48 = vadd.f32 %v3808_v2, %v3742_v42  ;;  %v3744_v29 = vpop.f32.mrb[5].mxu1 }
 0x5a3   : > { %v3840_v33 = vadd.f32 %v3808_v2, %v3744_v29  ;;  %v3746_v12 = vpop.f32.mrb[6].mxu1 }
 0x5a4   : > { %v3871_v5 = vadd.f32 %v3855_v43, %v3839_v48  ;;  %v3841_v35 = vadd.f32 %v3813_v18, %v3746_v12  ;;  %v3748_v36 = vpop.f32.mrb[7].mxu1 }
 0x5a5   : > { %v3872_v53 = vadd.f32 %v3856_v44, %v3840_v33  ;;  %v3842_v57 = vadd.f32 %v3813_v18, %v3748_v36 }
 0x5a6   : > { %3887 = vst [vmem:[%s6097_s28 + $0x20] sm:$0xff] %v3871_v5  ;;  %v3873_v0 = vadd.f32 %v3857_v6, %v3841_v35 }
 0x5a7   : > { %3888 = vst [vmem:[%s6097_s28 + $0x28] sm:$0xff] %v3872_v53  ;;  %v3874_v63 = vadd.f32 %v3858_v34, %v3842_v57 }
 0x5a8   : > { %3889 = vst [vmem:[%s6097_s28 + $0x30] sm:$0xff] %v3873_v0 }
 0x5a9   : > { %3890 = vst [vmem:[%s6097_s28 + $0x38] sm:$0xff] %v3874_v63  ;;  %v3752_v27 = vpop.f32.mrb[8].mxu1 }
 0x5aa   : > { %v3843_v31 = vadd.f32 %v3818_v15, %v3752_v27  ;;  %v3754_v46 = vpop.f32.mrb[9].mxu1 }
 0x5ab   : > { %v3844_v8 = vadd.f32 %v3818_v15, %v3754_v46  ;;  %v3756_v52 = vpop.f32.mrb[10].mxu1 }
 0x5ac   : > { %v3875_v3 = vadd.f32 %v3859_v23, %v3843_v31  ;;  %v3845_v28 = vadd.f32 %v3823_v21, %v3756_v52  ;;  %v3758_v4 = vpop.f32.mrb[11].mxu1 }
 0x5ad   : > { %v3876_v20 = vadd.f32 %v3860_v49, %v3844_v8  ;;  %v3846_v7 = vadd.f32 %v3823_v21, %v3758_v4 }
 0x5ae   : > { %3891 = vst [vmem:[%s6097_s28 + $0x40] sm:$0xff] %v3875_v3  ;;  %v3877_v9 = vadd.f32 %v3861_v54, %v3845_v28 }
 0x5af   : > { %3892 = vst [vmem:[%s6097_s28 + $0x48] sm:$0xff] %v3876_v20  ;;  %v3878_v58 = vadd.f32 %v3862_v60, %v3846_v7 }
 0x5b0   : > { %3893 = vst [vmem:[%s6097_s28 + $0x50] sm:$0xff] %v3877_v9 }
 0x5b1   : > { %3894 = vst [vmem:[%s6097_s28 + $0x58] sm:$0xff] %v3878_v58  ;;  %v3762_v45 = vpop.f32.mrb[12].mxu1 }
 0x5b2   : > { %v3847_v10 = vadd.f32 %v3828_v51, %v3762_v45  ;;  %v3764_v11 = vpop.f32.mrb[13].mxu1 }
 0x5b3   : > { %v3848_v14 = vadd.f32 %v3828_v51, %v3764_v11  ;;  %v3766_v37 = vpop.f32.mrb[14].mxu1 }
 0x5b4   : > { %v3879_v16 = vadd.f32 %v3863_v17, %v3847_v10  ;;  %v3849_v19 = vadd.f32 %v3833_v13, %v3766_v37  ;;  %v3768_v22 = vpop.f32.mrb[15].mxu1 }
 0x5b5   : > { %v3880_v55 = vadd.f32 %v3864_v40, %v3848_v14  ;;  %v3850_v25 = vadd.f32 %v3833_v13, %v3768_v22 }
 0x5b6   : > { %3895 = vst [vmem:[%s6097_s28 + $0x60] sm:$0xff] %v3879_v16  ;;  %v3881_v30 = vadd.f32 %v3865_v1, %v3849_v19 }
 0x5b7   : > { %3896 = vst [vmem:[%s6097_s28 + $0x68] sm:$0xff] %v3880_v55  ;;  %v3882_v62 = vadd.f32 %v3866_v50, %v3850_v25 }
 0x5b8   : > { %3897 = vst [vmem:[%s6097_s28 + $0x70] sm:$0xff] %v3881_v30 }
 0x5b9   : > { %3898 = vst [vmem:[%s6097_s28 + $0x78] sm:$0xff] %v3882_v62 }
 0x5ba PF: > { %s15_s18 = sadd.s32 1, %s4614_s18  }
 0x5bb   : > { %p12_p4 = scmp.ge.s32.totalorder %s15_s18, 4  }
 0x5bd   :  { %14 = sbr.rel (!%p12_p4) target bundleno = 1 (0x1), region = 86 }

</bundles_post_ra>
